<compile_context>
chip_gen: v6e
topology: v6e:2x2x1
jax: 0.10.0
libtpu: 0.0.40
codegen_flags: <defaults>
</compile_context>

<pallas_src>
import jax
import jax.numpy as jnp
from jax.experimental import pallas as pl
from jax.experimental.pallas import tpu as pltpu

# small, forward-consistent sizes (module uses HIDDEN_SIZE=1000, NUM_DIRS=2)
HIDDEN_SIZE = 32
NUM_DIRS = 2
D = HIDDEN_SIZE * NUM_DIRS          # encoder/decoder feature dim (ht/hs last dim)
B = 2                               # batch
S = 16                              # source sequence length (2 S blocks of 8)


def attn_kernel(ht_ref, hs_ref, mask_ref, wc_ref, wt_ref, b_ref,
                qua_ref, c_ref, m_sc, l_sc, ctx_sc):
    j = pl.program_id(1)                                   # S-block index (reduction)

    @pl.when(j == 0)
    def _init():
        m_sc[...] = jnp.full(m_sc.shape, -jnp.inf, m_sc.dtype)
        l_sc[...] = jnp.zeros(l_sc.shape, l_sc.dtype)
        ctx_sc[...] = jnp.zeros(ctx_sc.shape, ctx_sc.dtype)

    # bf16 activations are upcast once per block: mask fill / exp / accumulation all
    # happen in f32 (review correctness note).
    ht = ht_ref[...].astype(jnp.float32)                   # (TB, D)
    hs = hs_ref[...].astype(jnp.float32)                   # (TB, TS, D)
    pad = mask_ref[0] > 0                                  # (TB, TS), True = padding

    # alignment scores for this S block: query length is 1, so
    # score[b, t] = <ht[b], hs[b, t]>  (VPU multiply + lane reduce; no transpose,
    # no M=1 MXU matmuls).  Temporaries are bounded by the (TB, TS, D) block.
    s = jnp.sum(ht[:, None, :] * hs, axis=-1)              # (TB, TS) f32
    s = jnp.where(pad, jnp.float32(-10000.0), s)           # masked_fill(-10000)

    # flash-style online softmax across S blocks (m/l/ctx carried in VMEM scratch)
    m_prev = m_sc[...]
    m_new = jnp.maximum(m_prev, jnp.max(s, axis=-1, keepdims=True))
    alpha = jnp.exp(m_prev - m_new)
    p = jnp.exp(s - m_new)                                 # (TB, TS) f32
    l_sc[...] = alpha * l_sc[...] + jnp.sum(p, axis=-1, keepdims=True)
    ctx_sc[...] = alpha * ctx_sc[...] + jnp.sum(p[:, :, None] * hs, axis=1)
    m_sc[...] = m_new

    @pl.when(j == pl.num_programs(1) - 1)
    def _epilogue():
        inv = pl.reciprocal(l_sc[...], approx=True)        # softmax denom on the EUP
        ctx = ctx_sc[...] * inv                            # (TB, D) f32 context
        c_ref[...] = ctx.astype(c_ref.dtype)
        # qua = tanh(concat(ctx, ht) @ Wc^T + b): the concat is eliminated by
        # pre-splitting Wc^T into its ctx-half and ht-half -> two accumulating MXU
        # dots with bf16 operands and f32 accumulation, M = batch block.
        acc = jnp.dot(ctx.astype(jnp.bfloat16), wc_ref[...],
                      preferred_element_type=jnp.float32)
        acc = acc + jnp.dot(ht_ref[...], wt_ref[...],
                            preferred_element_type=jnp.float32)
        qua_ref[...] = jnp.tanh(acc + b_ref[...]).astype(qua_ref.dtype)


def _pick_tb(b):
    # Batch rows per grid step:
    #  * large batch: 256 fills the 2x256^2 MXU M dim on v6e/v7x for the Wc dots
    #    (v5e's 4x128^2 MXU is already full at 128, which 256 also satisfies);
    #  * medium batch: aim for >= 2 batch programs so the "parallel" axis shards
    #    across v7x's two TensorCores;
    #  * block dims must be a multiple of 8 (sublane rule) or equal the full batch.
    # A partial final batch block computes on padding rows; those results are
    # discarded on writeback, which is cheaper than a masked path.
    if b >= 512:
        return 256
    if b >= 16:
        half = -(-b // 2)
        return min(256, -(-half // 8) * 8)
    return b


def _pick_ts(s):
    # Source-length tile (grid reduction axis, online softmax).  Kept small so the
    # (TB, TS, D) hs block and its f32 temporaries stay bounded for any S; must
    # divide S and be a multiple of 8, otherwise fall back to a single full-S block.
    for cand in (16, 8):
        if s % cand == 0 and s > cand:
            return cand
    return s


def _vmem_limit(tb, ts, d, resident_weights):
    # Computed from the actual block/scratch footprint (review item), 2x headroom
    # for compiler temporaries, clamped to 3/4 of physical VMEM (128 MiB on
    # v5e/v6e, 64 MiB on v7x).
    wbuf = 1 if resident_weights else 2
    need = (2 * tb * ts * d * 2          # hs block, bf16, double-buffered
            + 2 * tb * d * 2             # ht block, bf16
            + 2 * tb * ts * 4            # mask block, f32
            + wbuf * 2 * d * d * 2       # two bf16 Wc halves
            + wbuf * d * 4               # bias
            + 2 * 2 * tb * d * 4         # qua + c output blocks, f32
            + (tb * d + 2 * tb) * 4)     # scratch: ctx, m, l
    try:
        phys = pltpu.get_tpu_info().vmem_capacity_bytes
    except Exception:
        phys = 64 * 1024 * 1024          # v7x floor
    return int(min(max(2 * need, 16 * 1024 * 1024), (phys * 3) // 4))


def attn_forward(ht, hs, mask0, wc_weight, wc_bias):
    """ht: (B,1,D), hs: (B,S,D) (consumed as bf16, no padding), mask0: (B,S) bool
    (True = padding, i.e. mask[0] in the module), wc_weight: (D, 2D) f32 (PyTorch
    nn.Linear layout), wc_bias: (D,) f32."""
    Bx, _, Dx = ht.shape
    Sx = hs.shape[1]

    TB = _pick_tb(Bx)
    TS = _pick_ts(Sx)
    assert Sx % TS == 0
    nb = pl.cdiv(Bx, TB)
    ns = Sx // TS

    # Activations: no pad / no f32 upcast on the wrapper side (the kernel reads bf16
    # directly); the (B,1,D)->(B,D) reshape is metadata-only.
    ht2 = ht.reshape(Bx, Dx).astype(jnp.bfloat16)
    hs3 = hs.astype(jnp.bfloat16)

    # Mask: tiny (B*S) tensor.  Reshaped to (ns, B, TS) so each S-block's mask tile
    # keeps full array extents in its last two dims (no sub-128 lane tiling, no
    # in-kernel transpose).
    mask3 = mask0.reshape(Bx, ns, TS).transpose(1, 0, 2).astype(jnp.float32)

    # Wc (PyTorch layout (D, 2D)) -> split halves, transpose for right-matmul, bf16.
    w_c = wc_weight[:, :Dx].T.astype(jnp.bfloat16)         # multiplies the context
    w_t = wc_weight[:, Dx:].T.astype(jnp.bfloat16)         # multiplies ht
    bias = wc_bias.reshape(1, Dx).astype(jnp.float32)

    out_shape = (jax.ShapeDtypeStruct((Bx, Dx), jnp.float32),
                 jax.ShapeDtypeStruct((Bx, Dx), jnp.float32))

    def _run(resident_weights):
        if resident_weights:
            # Single-copy resident weights/bias in VMEM (review: don't double-buffer
            # operands with a constant block index).
            w_spec_c = pl.BlockSpec(memory_space=pltpu.MemorySpace.VMEM)
            w_spec_t = pl.BlockSpec(memory_space=pltpu.MemorySpace.VMEM)
            b_spec = pl.BlockSpec(memory_space=pltpu.MemorySpace.VMEM)
        else:
            w_spec_c = pl.BlockSpec((Dx, Dx), lambda i, j: (0, 0))
            w_spec_t = pl.BlockSpec((Dx, Dx), lambda i, j: (0, 0))
            b_spec = pl.BlockSpec((1, Dx), lambda i, j: (0, 0))

        grid_spec = pltpu.PrefetchScalarGridSpec(
            num_scalar_prefetch=0,
            grid=(nb, ns),                                 # reduction axis (S) last
            in_specs=[
                pl.BlockSpec((TB, Dx), lambda i, j: (i, 0)),          # ht (bf16)
                pl.BlockSpec((TB, TS, Dx), lambda i, j: (i, j, 0)),   # hs (bf16)
                pl.BlockSpec((1, TB, TS), lambda i, j: (j, i, 0)),    # mask tile
                w_spec_c,                                             # Wc^T ctx half
                w_spec_t,                                             # Wc^T ht half
                b_spec,                                               # bias
            ],
            out_specs=[
                pl.BlockSpec((TB, Dx), lambda i, j: (i, 0)),          # qua_in
                pl.BlockSpec((TB, Dx), lambda i, j: (i, 0)),          # c
            ],
            scratch_shapes=[
                pltpu.VMEM((TB, 1), jnp.float32),    # running max m
                pltpu.VMEM((TB, 1), jnp.float32),    # running denom l
                pltpu.VMEM((TB, Dx), jnp.float32),   # running context
            ],
        )
        return pl.pallas_call(
            attn_kernel,
            grid_spec=grid_spec,
            out_shape=out_shape,
            compiler_params=pltpu.CompilerParams(
                dimension_semantics=("parallel", "arbitrary"),
                vmem_limit_bytes=_vmem_limit(TB, TS, Dx, resident_weights),
            ),
        )(ht2, hs3, mask3, w_c, w_t, bias)

    try:
        qua_p, c_p = _run(True)
    except Exception:
        # If this jax version rejects whole-array VMEM operands, fall back to the
        # constant-index_map (double-buffered) weight blocks.
        qua_p, c_p = _run(False)

    return qua_p.reshape(Bx, 1, Dx), c_p.reshape(Bx, 1, Dx)


def attn_reference(ht, hs, mask0, wc_weight, wc_bias):
    ht = ht.astype(jnp.float32)
    hs = hs.astype(jnp.float32)
    scores = jnp.einsum("bqd,bkd->bqk", ht, hs)
    scores = jnp.where(mask0[:, None, :], -10000.0, scores)
    a = jax.nn.softmax(scores, axis=2)
    c = jnp.einsum("bqk,bkd->bqd", a, hs)
    h = jnp.concatenate([c, ht], axis=2)
    qua_in = jnp.tanh(jnp.einsum("bqi,oi->bqo", h, wc_weight) + wc_bias)
    return qua_in, c


if __name__ == "__main__":
    key = jax.random.PRNGKey(0)
    k_ht, k_hs, k_w, k_b = jax.random.split(key, 4)

    # Activations kept in bf16 (model-native dtype) so the kernel reads them with
    # no extra cast/pad pass over HBM.
    ht = jax.random.normal(k_ht, (B, 1, D), dtype=jnp.float32).astype(jnp.bfloat16)
    hs = jax.random.normal(k_hs, (B, S, D), dtype=jnp.float32).astype(jnp.bfloat16)

    # padding mask (True = pad): batch element 1 has only 5 valid source positions,
    # so both S blocks (TS=8) contain masked positions (second block fully masked).
    mask0 = jnp.zeros((B, S), dtype=bool).at[1, 5:].set(True)

    # PyTorch nn.Linear default init: U(-1/sqrt(fan_in), 1/sqrt(fan_in))
    fan_in = 2 * D
    bound = 1.0 / float(fan_in) ** 0.5
    wc_weight = jax.random.uniform(k_w, (D, 2 * D), jnp.float32, -bound, bound)
    wc_bias = jax.random.uniform(k_b, (D,), jnp.float32, -bound, bound)

    qua_in, c = attn_forward(ht, hs, mask0, wc_weight, wc_bias)
    jax.block_until_ready((qua_in, c))

    q_ref, c_ref = attn_reference(ht, hs, mask0, wc_weight, wc_bias)
    # Tolerances relaxed vs. the f32 reference: the kernel uses bf16 weights / bf16
    # context operand for the MXU dots (f32 accumulation) and an EUP approx
    # reciprocal for the softmax denominator.
    assert jnp.allclose(c, c_ref, atol=5e-3, rtol=5e-3), \
        float(jnp.max(jnp.abs(c - c_ref)))
    assert jnp.allclose(qua_in, q_ref, atol=3e-2, rtol=3e-2), \
        float(jnp.max(jnp.abs(qua_in - q_ref)))

    print("KERNEL_OK")
</pallas_src>

<mosaic_0001>
module attributes {stable_mosaic.version = 11 : i64} {
  func.func @attn_kernel(%arg0: i32, %arg1: i32, %arg2: memref<2x64xbf16, #tpu.memory_space<vmem>>, %arg3: memref<2x8x64xbf16, #tpu.memory_space<vmem>>, %arg4: memref<1x2x8xf32, #tpu.memory_space<vmem>>, %arg5: memref<64x64xbf16, #tpu.memory_space<vmem>>, %arg6: memref<64x64xbf16, #tpu.memory_space<vmem>>, %arg7: memref<1x64xf32, #tpu.memory_space<vmem>>, %arg8: memref<2x64xf32, #tpu.memory_space<vmem>>, %arg9: memref<2x64xf32, #tpu.memory_space<vmem>>, %arg10: memref<2x1xf32, #tpu.memory_space<vmem>>, %arg11: memref<2x1xf32, #tpu.memory_space<vmem>>, %arg12: memref<2x64xf32, #tpu.memory_space<vmem>>) attributes {dimension_semantics = [#tpu.dimension_semantics<parallel>, #tpu.dimension_semantics<arbitrary>], iteration_bounds = array<i64: 1, 2>, scalar_prefetch = 0 : i64, scratch_operands = 3 : i64, tpu.core_type = #tpu.core_type<tc>, window_params = [{transform_indices = @transform_0, window_bounds = array<i64: 2, 64>}, {transform_indices = @transform_1, window_bounds = array<i64: 2, 8, 64>}, {transform_indices = @transform_2, window_bounds = array<i64: 1, 2, 8>}, {pipeline_mode = #tpu.pipeline_mode<synchronous>, transform_indices = @transform_3, window_bounds = array<i64: 64, 64>}, {pipeline_mode = #tpu.pipeline_mode<synchronous>, transform_indices = @transform_4, window_bounds = array<i64: 64, 64>}, {pipeline_mode = #tpu.pipeline_mode<synchronous>, transform_indices = @transform_5, window_bounds = array<i64: 1, 64>}, {transform_indices = @transform_6, window_bounds = array<i64: 2, 64>}, {transform_indices = @transform_7, window_bounds = array<i64: 2, 64>}]} {
    %c0_i32 = arith.constant 0 : i32
    %0 = arith.cmpi eq, %arg1, %c0_i32 : i32
    %1 = arith.extui %0 : i1 to i32
    %c0_i32_0 = arith.constant 0 : i32
    %2 = arith.cmpi ne, %1, %c0_i32_0 : i32
    scf.if %2 {
      %cst_26 = arith.constant 0xFF800000 : f32
      %45 = vector.broadcast %cst_26 : f32 to vector<2x1xf32>
      %c0_27 = arith.constant 0 : index
      %c0_28 = arith.constant 0 : index
      %46 = vector.load %arg10[%c0_27, %c0_28] : memref<2x1xf32, #tpu.memory_space<vmem>>, vector<2x1xf32>
      tpu.vector_store %arg10[%c0_27, %c0_28], %45 {strides = array<i32>} : memref<2x1xf32, #tpu.memory_space<vmem>>, vector<2x1xf32>,
      %cst_29 = arith.constant 0.000000e+00 : f32
      %47 = vector.broadcast %cst_29 : f32 to vector<2x1xf32>
      %c0_30 = arith.constant 0 : index
      %c0_31 = arith.constant 0 : index
      %48 = vector.load %arg11[%c0_30, %c0_31] : memref<2x1xf32, #tpu.memory_space<vmem>>, vector<2x1xf32>
      tpu.vector_store %arg11[%c0_30, %c0_31], %47 {strides = array<i32>} : memref<2x1xf32, #tpu.memory_space<vmem>>, vector<2x1xf32>,
      %cst_32 = arith.constant 0.000000e+00 : f32
      %49 = vector.broadcast %cst_32 : f32 to vector<2x64xf32>
      %c0_33 = arith.constant 0 : index
      %c0_34 = arith.constant 0 : index
      %50 = vector.load %arg12[%c0_33, %c0_34] : memref<2x64xf32, #tpu.memory_space<vmem>>, vector<2x64xf32>
      tpu.vector_store %arg12[%c0_33, %c0_34], %49 {strides = array<i32>} : memref<2x64xf32, #tpu.memory_space<vmem>>, vector<2x64xf32>,
    } else {
    }
    %c0 = arith.constant 0 : index
    %c0_1 = arith.constant 0 : index
    %3 = vector.load %arg2[%c0, %c0_1] : memref<2x64xbf16, #tpu.memory_space<vmem>>, vector<2x64xbf16>
    %4 = arith.extf %3 : vector<2x64xbf16> to vector<2x64xf32>
    %c0_2 = arith.constant 0 : index
    %c0_3 = arith.constant 0 : index
    %c0_4 = arith.constant 0 : index
    %5 = vector.load %arg3[%c0_2, %c0_3, %c0_4] : memref<2x8x64xbf16, #tpu.memory_space<vmem>>, vector<2x8x64xbf16>
    %6 = arith.extf %5 : vector<2x8x64xbf16> to vector<2x8x64xf32>
    %c0_5 = arith.constant 0 : index
    %c0_6 = arith.constant 0 : index
    %c0_7 = arith.constant 0 : index
    %7 = vector.load %arg4[%c0_5, %c0_6, %c0_7] : memref<1x2x8xf32, #tpu.memory_space<vmem>>, vector<1x2x8xf32>
    %8 = vector.shape_cast %7 : vector<1x2x8xf32> to vector<2x8xf32>
    %cst = arith.constant 0.000000e+00 : f32
    %9 = vector.broadcast %cst : f32 to vector<2x8xf32>
    %10 = arith.cmpf ogt, %8, %9 : vector<2x8xf32>
    %11 = vector.shape_cast %4 : vector<2x64xf32> to vector<2x1x64xf32>
    %12 = vector.broadcast %11 : vector<2x1x64xf32> to vector<2x8x64xf32>
    %13 = arith.mulf %12, %6 : vector<2x8x64xf32>
    %cst_8 = arith.constant dense<0.000000e+00> : vector<2x8xf32>
    %14 = vector.multi_reduction <add>, %13, %cst_8 [2] : vector<2x8x64xf32> to vector<2x8xf32>
    %cst_9 = arith.constant -1.000000e+04 : f32
    %15 = vector.broadcast %cst_9 : f32 to vector<2x8xf32>
    %16 = arith.select %10, %15, %14 : vector<2x8xi1>, vector<2x8xf32>
    %c0_10 = arith.constant 0 : index
    %c0_11 = arith.constant 0 : index
    %17 = vector.load %arg10[%c0_10, %c0_11] : memref<2x1xf32, #tpu.memory_space<vmem>>, vector<2x1xf32>
    %cst_12 = arith.constant dense<0xFF800000> : vector<2xf32>
    %18 = vector.multi_reduction <maximumf>, %16, %cst_12 [1] : vector<2x8xf32> to vector<2xf32>
    %19 = vector.shape_cast %18 : vector<2xf32> to vector<2x1xf32>
    %20 = arith.maximumf %17, %19 : vector<2x1xf32>
    %21 = arith.subf %17, %20 : vector<2x1xf32>
    %22 = math.exp %21 : vector<2x1xf32>
    %23 = vector.broadcast %20 : vector<2x1xf32> to vector<2x8xf32>
    %24 = arith.subf %16, %23 : vector<2x8xf32>
    %25 = math.exp %24 : vector<2x8xf32>
    %c0_13 = arith.constant 0 : index
    %c0_14 = arith.constant 0 : index
    %26 = vector.load %arg11[%c0_13, %c0_14] : memref<2x1xf32, #tpu.memory_space<vmem>>, vector<2x1xf32>
    %27 = arith.mulf %22, %26 : vector<2x1xf32>
    %cst_15 = arith.constant dense<0.000000e+00> : vector<2xf32>
    %28 = vector.multi_reduction <add>, %25, %cst_15 [1] : vector<2x8xf32> to vector<2xf32>
    %29 = vector.shape_cast %28 : vector<2xf32> to vector<2x1xf32>
    %30 = arith.addf %27, %29 : vector<2x1xf32>
    %c0_16 = arith.constant 0 : index
    %c0_17 = arith.constant 0 : index
    %31 = vector.load %arg11[%c0_16, %c0_17] : memref<2x1xf32, #tpu.memory_space<vmem>>, vector<2x1xf32>
    tpu.vector_store %arg11[%c0_16, %c0_17], %30 {strides = array<i32>} : memref<2x1xf32, #tpu.memory_space<vmem>>, vector<2x1xf32>,
    %c0_18 = arith.constant 0 : index
    %c0_19 = arith.constant 0 : index
    %32 = vector.load %arg12[%c0_18, %c0_19] : memref<2x64xf32, #tpu.memory_space<vmem>>, vector<2x64xf32>
    %33 = vector.broadcast %22 : vector<2x1xf32> to vector<2x64xf32>
    %34 = arith.mulf %33, %32 : vector<2x64xf32>
    %35 = vector.shape_cast %25 : vector<2x8xf32> to vector<2x8x1xf32>
    %36 = vector.broadcast %35 : vector<2x8x1xf32> to vector<2x8x64xf32>
    %37 = arith.mulf %36, %6 : vector<2x8x64xf32>
    %cst_20 = arith.constant dense<0.000000e+00> : vector<2x64xf32>
    %38 = vector.multi_reduction <add>, %37, %cst_20 [1] : vector<2x8x64xf32> to vector<2x64xf32>
    %39 = arith.addf %34, %38 : vector<2x64xf32>
    %c0_21 = arith.constant 0 : index
    %c0_22 = arith.constant 0 : index
    %40 = vector.load %arg12[%c0_21, %c0_22] : memref<2x64xf32, #tpu.memory_space<vmem>>, vector<2x64xf32>
    tpu.vector_store %arg12[%c0_21, %c0_22], %39 {strides = array<i32>} : memref<2x64xf32, #tpu.memory_space<vmem>>, vector<2x64xf32>,
    %c0_23 = arith.constant 0 : index
    %c0_24 = arith.constant 0 : index
    %41 = vector.load %arg10[%c0_23, %c0_24] : memref<2x1xf32, #tpu.memory_space<vmem>>, vector<2x1xf32>
    tpu.vector_store %arg10[%c0_23, %c0_24], %20 {strides = array<i32>} : memref<2x1xf32, #tpu.memory_space<vmem>>, vector<2x1xf32>,
    %c1_i32 = arith.constant 1 : i32
    %42 = arith.cmpi eq, %arg1, %c1_i32 : i32
    %43 = arith.extui %42 : i1 to i32
    %c0_i32_25 = arith.constant 0 : i32
    %44 = arith.cmpi ne, %43, %c0_i32_25 : i32
    scf.if %44 {
      %c0_26 = arith.constant 0 : index
      %c0_27 = arith.constant 0 : index
      %45 = vector.load %arg11[%c0_26, %c0_27] : memref<2x1xf32, #tpu.memory_space<vmem>>, vector<2x1xf32>
      %46 = tpu.reciprocal %45 {approx = true} : vector<2x1xf32> -> vector<2x1xf32>
      %c0_28 = arith.constant 0 : index
      %c0_29 = arith.constant 0 : index
      %47 = vector.load %arg12[%c0_28, %c0_29] : memref<2x64xf32, #tpu.memory_space<vmem>>, vector<2x64xf32>
      %48 = vector.broadcast %46 : vector<2x1xf32> to vector<2x64xf32>
      %49 = arith.mulf %47, %48 : vector<2x64xf32>
      %c0_30 = arith.constant 0 : index
      %c0_31 = arith.constant 0 : index
      %50 = vector.load %arg9[%c0_30, %c0_31] : memref<2x64xf32, #tpu.memory_space<vmem>>, vector<2x64xf32>
      tpu.vector_store %arg9[%c0_30, %c0_31], %49 {strides = array<i32>} : memref<2x64xf32, #tpu.memory_space<vmem>>, vector<2x64xf32>,
      %51 = arith.truncf %49 : vector<2x64xf32> to vector<2x64xbf16>
      %c0_32 = arith.constant 0 : index
      %c0_33 = arith.constant 0 : index
      %52 = vector.load %arg5[%c0_32, %c0_33] : memref<64x64xbf16, #tpu.memory_space<vmem>>, vector<64x64xbf16>
      %cst_34 = arith.constant dense<0.000000e+00> : vector<2x64xf32>
      %53 = tpu.matmul %51, %52, %cst_34 {dimension_numbers = #tpu.dot_dimension_numbers<[1], [0], [0], [1], [0, 0, 1, 1], [], []>} : vector<2x64xbf16>, vector<64x64xbf16>, vector<2x64xf32> -> vector<2x64xf32>
      %c0_35 = arith.constant 0 : index
      %c0_36 = arith.constant 0 : index
      %54 = vector.load %arg2[%c0_35, %c0_36] : memref<2x64xbf16, #tpu.memory_space<vmem>>, vector<2x64xbf16>
      %c0_37 = arith.constant 0 : index
      %c0_38 = arith.constant 0 : index
      %55 = vector.load %arg6[%c0_37, %c0_38] : memref<64x64xbf16, #tpu.memory_space<vmem>>, vector<64x64xbf16>
      %cst_39 = arith.constant dense<0.000000e+00> : vector<2x64xf32>
      %56 = tpu.matmul %54, %55, %cst_39 {dimension_numbers = #tpu.dot_dimension_numbers<[1], [0], [0], [1], [0, 0, 1, 1], [], []>} : vector<2x64xbf16>, vector<64x64xbf16>, vector<2x64xf32> -> vector<2x64xf32>
      %57 = arith.addf %53, %56 : vector<2x64xf32>
      %c0_40 = arith.constant 0 : index
      %c0_41 = arith.constant 0 : index
      %58 = vector.load %arg7[%c0_40, %c0_41] : memref<1x64xf32, #tpu.memory_space<vmem>>, vector<1x64xf32>
      %59 = vector.broadcast %58 : vector<1x64xf32> to vector<2x64xf32>
      %60 = arith.addf %57, %59 : vector<2x64xf32>
      %61 = math.tanh %60 : vector<2x64xf32>
      %c0_42 = arith.constant 0 : index
      %c0_43 = arith.constant 0 : index
      %62 = vector.load %arg8[%c0_42, %c0_43] : memref<2x64xf32, #tpu.memory_space<vmem>>, vector<2x64xf32>
      tpu.vector_store %arg8[%c0_42, %c0_43], %61 {strides = array<i32>} : memref<2x64xf32, #tpu.memory_space<vmem>>, vector<2x64xf32>,
    } else {
    }
    return
  }
  func.func @transform_0(%arg0: i32, %arg1: i32) -> (i32, i32) {
    %c0_i32 = arith.constant 0 : i32
    %c0_i32_0 = arith.constant 0 : i32
    return %arg0, %c0_i32 : i32, i32
  }
  func.func @transform_1(%arg0: i32, %arg1: i32) -> (i32, i32, i32) {
    %c0_i32 = arith.constant 0 : i32
    %c0_i32_0 = arith.constant 0 : i32
    return %arg0, %arg1, %c0_i32 : i32, i32, i32
  }
  func.func @transform_2(%arg0: i32, %arg1: i32) -> (i32, i32, i32) {
    %c0_i32 = arith.constant 0 : i32
    %c0_i32_0 = arith.constant 0 : i32
    return %arg1, %arg0, %c0_i32 : i32, i32, i32
  }
  func.func @transform_3(%arg0: i32, %arg1: i32) -> (i32, i32) {
    %c0_i32 = arith.constant 0 : i32
    %c0_i32_0 = arith.constant 0 : i32
    %c0_i32_1 = arith.constant 0 : i32
    return %c0_i32, %c0_i32_0 : i32, i32
  }
  func.func @transform_4(%arg0: i32, %arg1: i32) -> (i32, i32) {
    %c0_i32 = arith.constant 0 : i32
    %c0_i32_0 = arith.constant 0 : i32
    %c0_i32_1 = arith.constant 0 : i32
    return %c0_i32, %c0_i32_0 : i32, i32
  }
  func.func @transform_5(%arg0: i32, %arg1: i32) -> (i32, i32) {
    %c0_i32 = arith.constant 0 : i32
    %c0_i32_0 = arith.constant 0 : i32
    %c0_i32_1 = arith.constant 0 : i32
    return %c0_i32, %c0_i32_0 : i32, i32
  }
  func.func @transform_6(%arg0: i32, %arg1: i32) -> (i32, i32) {
    %c0_i32 = arith.constant 0 : i32
    %c0_i32_0 = arith.constant 0 : i32
    return %arg0, %c0_i32 : i32, i32
  }
  func.func @transform_7(%arg0: i32, %arg1: i32) -> (i32, i32) {
    %c0_i32 = arith.constant 0 : i32
    %c0_i32_0 = arith.constant 0 : i32
    return %arg0, %c0_i32 : i32, i32
  }
}

module attributes {stable_mosaic.version = 11 : i64} {
  func.func @attn_kernel(%arg0: i32, %arg1: i32, %arg2: memref<2x64xbf16, #tpu.memory_space<vmem>>, %arg3: memref<2x8x64xbf16, #tpu.memory_space<vmem>>, %arg4: memref<1x2x8xf32, #tpu.memory_space<vmem>>, %arg5: memref<64x64xbf16, #tpu.memory_space<vmem>>, %arg6: memref<64x64xbf16, #tpu.memory_space<vmem>>, %arg7: memref<1x64xf32, #tpu.memory_space<vmem>>, %arg8: memref<2x64xf32, #tpu.memory_space<vmem>>, %arg9: memref<2x64xf32, #tpu.memory_space<vmem>>, %arg10: memref<2x1xf32, #tpu.memory_space<vmem>>, %arg11: memref<2x1xf32, #tpu.memory_space<vmem>>, %arg12: memref<2x64xf32, #tpu.memory_space<vmem>>) attributes {dimension_semantics = [#tpu.dimension_semantics<parallel>, #tpu.dimension_semantics<arbitrary>], iteration_bounds = array<i64: 1, 2>, scalar_prefetch = 0 : i64, scratch_operands = 3 : i64, tpu.core_type = #tpu.core_type<tc>, window_params = [{transform_indices = @transform_0, window_bounds = array<i64: 2, 64>}, {transform_indices = @transform_1, window_bounds = array<i64: 2, 8, 64>}, {transform_indices = @transform_2, window_bounds = array<i64: 1, 2, 8>}, {pipeline_mode = #tpu.pipeline_mode<synchronous>, transform_indices = @transform_3, window_bounds = array<i64: 64, 64>}, {pipeline_mode = #tpu.pipeline_mode<synchronous>, transform_indices = @transform_4, window_bounds = array<i64: 64, 64>}, {pipeline_mode = #tpu.pipeline_mode<synchronous>, transform_indices = @transform_5, window_bounds = array<i64: 1, 64>}, {transform_indices = @transform_6, window_bounds = array<i64: 2, 64>}, {transform_indices = @transform_7, window_bounds = array<i64: 2, 64>}]} {
    %c0_i32 = arith.constant 0 : i32
    %0 = arith.cmpi eq, %arg1, %c0_i32 : i32
    %1 = arith.extui %0 : i1 to i32
    %c0_i32_0 = arith.constant 0 : i32
    %2 = arith.cmpi ne, %1, %c0_i32_0 : i32
    scf.if %2 {
      %cst_26 = arith.constant 0xFF800000 : f32
      %45 = vector.broadcast %cst_26 : f32 to vector<2x1xf32>
      %c0_27 = arith.constant 0 : index
      %c0_28 = arith.constant 0 : index
      %46 = vector.load %arg10[%c0_27, %c0_28] : memref<2x1xf32, #tpu.memory_space<vmem>>, vector<2x1xf32>
      tpu.vector_store %arg10[%c0_27, %c0_28], %45 {strides = array<i32>} : memref<2x1xf32, #tpu.memory_space<vmem>>, vector<2x1xf32>,
      %cst_29 = arith.constant 0.000000e+00 : f32
      %47 = vector.broadcast %cst_29 : f32 to vector<2x1xf32>
      %c0_30 = arith.constant 0 : index
      %c0_31 = arith.constant 0 : index
      %48 = vector.load %arg11[%c0_30, %c0_31] : memref<2x1xf32, #tpu.memory_space<vmem>>, vector<2x1xf32>
      tpu.vector_store %arg11[%c0_30, %c0_31], %47 {strides = array<i32>} : memref<2x1xf32, #tpu.memory_space<vmem>>, vector<2x1xf32>,
      %cst_32 = arith.constant 0.000000e+00 : f32
      %49 = vector.broadcast %cst_32 : f32 to vector<2x64xf32>
      %c0_33 = arith.constant 0 : index
      %c0_34 = arith.constant 0 : index
      %50 = vector.load %arg12[%c0_33, %c0_34] : memref<2x64xf32, #tpu.memory_space<vmem>>, vector<2x64xf32>
      tpu.vector_store %arg12[%c0_33, %c0_34], %49 {strides = array<i32>} : memref<2x64xf32, #tpu.memory_space<vmem>>, vector<2x64xf32>,
    } else {
    }
    %c0 = arith.constant 0 : index
    %c0_1 = arith.constant 0 : index
    %3 = vector.load %arg2[%c0, %c0_1] : memref<2x64xbf16, #tpu.memory_space<vmem>>, vector<2x64xbf16>
    %4 = arith.extf %3 : vector<2x64xbf16> to vector<2x64xf32>
    %c0_2 = arith.constant 0 : index
    %c0_3 = arith.constant 0 : index
    %c0_4 = arith.constant 0 : index
    %5 = vector.load %arg3[%c0_2, %c0_3, %c0_4] : memref<2x8x64xbf16, #tpu.memory_space<vmem>>, vector<2x8x64xbf16>
    %6 = arith.extf %5 : vector<2x8x64xbf16> to vector<2x8x64xf32>
    %c0_5 = arith.constant 0 : index
    %c0_6 = arith.constant 0 : index
    %c0_7 = arith.constant 0 : index
    %7 = vector.load %arg4[%c0_5, %c0_6, %c0_7] : memref<1x2x8xf32, #tpu.memory_space<vmem>>, vector<1x2x8xf32>
    %8 = vector.shape_cast %7 : vector<1x2x8xf32> to vector<2x8xf32>
    %cst = arith.constant 0.000000e+00 : f32
    %9 = vector.broadcast %cst : f32 to vector<2x8xf32>
    %10 = arith.cmpf ogt, %8, %9 : vector<2x8xf32>
    %11 = vector.shape_cast %4 : vector<2x64xf32> to vector<2x1x64xf32>
    %12 = vector.broadcast %11 : vector<2x1x64xf32> to vector<2x8x64xf32>
    %13 = arith.mulf %12, %6 : vector<2x8x64xf32>
    %cst_8 = arith.constant dense<0.000000e+00> : vector<2x8xf32>
    %14 = vector.multi_reduction <add>, %13, %cst_8 [2] : vector<2x8x64xf32> to vector<2x8xf32>
    %cst_9 = arith.constant -1.000000e+04 : f32
    %15 = vector.broadcast %cst_9 : f32 to vector<2x8xf32>
    %16 = arith.select %10, %15, %14 : vector<2x8xi1>, vector<2x8xf32>
    %c0_10 = arith.constant 0 : index
    %c0_11 = arith.constant 0 : index
    %17 = vector.load %arg10[%c0_10, %c0_11] : memref<2x1xf32, #tpu.memory_space<vmem>>, vector<2x1xf32>
    %cst_12 = arith.constant dense<0xFF800000> : vector<2xf32>
    %18 = vector.multi_reduction <maximumf>, %16, %cst_12 [1] : vector<2x8xf32> to vector<2xf32>
    %19 = vector.shape_cast %18 : vector<2xf32> to vector<2x1xf32>
    %20 = arith.maximumf %17, %19 : vector<2x1xf32>
    %21 = arith.subf %17, %20 : vector<2x1xf32>
    %22 = math.exp %21 : vector<2x1xf32>
    %23 = vector.broadcast %20 : vector<2x1xf32> to vector<2x8xf32>
    %24 = arith.subf %16, %23 : vector<2x8xf32>
    %25 = math.exp %24 : vector<2x8xf32>
    %c0_13 = arith.constant 0 : index
    %c0_14 = arith.constant 0 : index
    %26 = vector.load %arg11[%c0_13, %c0_14] : memref<2x1xf32, #tpu.memory_space<vmem>>, vector<2x1xf32>
    %27 = arith.mulf %22, %26 : vector<2x1xf32>
    %cst_15 = arith.constant dense<0.000000e+00> : vector<2xf32>
    %28 = vector.multi_reduction <add>, %25, %cst_15 [1] : vector<2x8xf32> to vector<2xf32>
    %29 = vector.shape_cast %28 : vector<2xf32> to vector<2x1xf32>
    %30 = arith.addf %27, %29 : vector<2x1xf32>
    %c0_16 = arith.constant 0 : index
    %c0_17 = arith.constant 0 : index
    %31 = vector.load %arg11[%c0_16, %c0_17] : memref<2x1xf32, #tpu.memory_space<vmem>>, vector<2x1xf32>
    tpu.vector_store %arg11[%c0_16, %c0_17], %30 {strides = array<i32>} : memref<2x1xf32, #tpu.memory_space<vmem>>, vector<2x1xf32>,
    %c0_18 = arith.constant 0 : index
    %c0_19 = arith.constant 0 : index
    %32 = vector.load %arg12[%c0_18, %c0_19] : memref<2x64xf32, #tpu.memory_space<vmem>>, vector<2x64xf32>
    %33 = vector.broadcast %22 : vector<2x1xf32> to vector<2x64xf32>
    %34 = arith.mulf %33, %32 : vector<2x64xf32>
    %35 = vector.shape_cast %25 : vector<2x8xf32> to vector<2x8x1xf32>
    %36 = vector.broadcast %35 : vector<2x8x1xf32> to vector<2x8x64xf32>
    %37 = arith.mulf %36, %6 : vector<2x8x64xf32>
    %cst_20 = arith.constant dense<0.000000e+00> : vector<2x64xf32>
    %38 = vector.multi_reduction <add>, %37, %cst_20 [1] : vector<2x8x64xf32> to vector<2x64xf32>
    %39 = arith.addf %34, %38 : vector<2x64xf32>
    %c0_21 = arith.constant 0 : index
    %c0_22 = arith.constant 0 : index
    %40 = vector.load %arg12[%c0_21, %c0_22] : memref<2x64xf32, #tpu.memory_space<vmem>>, vector<2x64xf32>
    tpu.vector_store %arg12[%c0_21, %c0_22], %39 {strides = array<i32>} : memref<2x64xf32, #tpu.memory_space<vmem>>, vector<2x64xf32>,
    %c0_23 = arith.constant 0 : index
    %c0_24 = arith.constant 0 : index
    %41 = vector.load %arg10[%c0_23, %c0_24] : memref<2x1xf32, #tpu.memory_space<vmem>>, vector<2x1xf32>
    tpu.vector_store %arg10[%c0_23, %c0_24], %20 {strides = array<i32>} : memref<2x1xf32, #tpu.memory_space<vmem>>, vector<2x1xf32>,
    %c1_i32 = arith.constant 1 : i32
    %42 = arith.cmpi eq, %arg1, %c1_i32 : i32
    %43 = arith.extui %42 : i1 to i32
    %c0_i32_25 = arith.constant 0 : i32
    %44 = arith.cmpi ne, %43, %c0_i32_25 : i32
    scf.if %44 {
      %c0_26 = arith.constant 0 : index
      %c0_27 = arith.constant 0 : index
      %45 = vector.load %arg11[%c0_26, %c0_27] : memref<2x1xf32, #tpu.memory_space<vmem>>, vector<2x1xf32>
      %46 = tpu.reciprocal %45 {approx = true} : vector<2x1xf32> -> vector<2x1xf32>
      %c0_28 = arith.constant 0 : index
      %c0_29 = arith.constant 0 : index
      %47 = vector.load %arg12[%c0_28, %c0_29] : memref<2x64xf32, #tpu.memory_space<vmem>>, vector<2x64xf32>
      %48 = vector.broadcast %46 : vector<2x1xf32> to vector<2x64xf32>
      %49 = arith.mulf %47, %48 : vector<2x64xf32>
      %c0_30 = arith.constant 0 : index
      %c0_31 = arith.constant 0 : index
      %50 = vector.load %arg9[%c0_30, %c0_31] : memref<2x64xf32, #tpu.memory_space<vmem>>, vector<2x64xf32>
      tpu.vector_store %arg9[%c0_30, %c0_31], %49 {strides = array<i32>} : memref<2x64xf32, #tpu.memory_space<vmem>>, vector<2x64xf32>,
      %51 = arith.truncf %49 : vector<2x64xf32> to vector<2x64xbf16>
      %c0_32 = arith.constant 0 : index
      %c0_33 = arith.constant 0 : index
      %52 = vector.load %arg5[%c0_32, %c0_33] : memref<64x64xbf16, #tpu.memory_space<vmem>>, vector<64x64xbf16>
      %cst_34 = arith.constant dense<0.000000e+00> : vector<2x64xf32>
      %53 = tpu.matmul %51, %52, %cst_34 {dimension_numbers = #tpu.dot_dimension_numbers<[1], [0], [0], [1], [0, 0, 1, 1], [], []>} : vector<2x64xbf16>, vector<64x64xbf16>, vector<2x64xf32> -> vector<2x64xf32>
      %c0_35 = arith.constant 0 : index
      %c0_36 = arith.constant 0 : index
      %54 = vector.load %arg2[%c0_35, %c0_36] : memref<2x64xbf16, #tpu.memory_space<vmem>>, vector<2x64xbf16>
      %c0_37 = arith.constant 0 : index
      %c0_38 = arith.constant 0 : index
      %55 = vector.load %arg6[%c0_37, %c0_38] : memref<64x64xbf16, #tpu.memory_space<vmem>>, vector<64x64xbf16>
      %cst_39 = arith.constant dense<0.000000e+00> : vector<2x64xf32>
      %56 = tpu.matmul %54, %55, %cst_39 {dimension_numbers = #tpu.dot_dimension_numbers<[1], [0], [0], [1], [0, 0, 1, 1], [], []>} : vector<2x64xbf16>, vector<64x64xbf16>, vector<2x64xf32> -> vector<2x64xf32>
      %57 = arith.addf %53, %56 : vector<2x64xf32>
      %c0_40 = arith.constant 0 : index
      %c0_41 = arith.constant 0 : index
      %58 = vector.load %arg7[%c0_40, %c0_41] : memref<1x64xf32, #tpu.memory_space<vmem>>, vector<1x64xf32>
      %59 = vector.broadcast %58 : vector<1x64xf32> to vector<2x64xf32>
      %60 = arith.addf %57, %59 : vector<2x64xf32>
      %61 = math.tanh %60 : vector<2x64xf32>
      %c0_42 = arith.constant 0 : index
      %c0_43 = arith.constant 0 : index
      %62 = vector.load %arg8[%c0_42, %c0_43] : memref<2x64xf32, #tpu.memory_space<vmem>>, vector<2x64xf32>
      tpu.vector_store %arg8[%c0_42, %c0_43], %61 {strides = array<i32>} : memref<2x64xf32, #tpu.memory_space<vmem>>, vector<2x64xf32>,
    } else {
    }
    return
  }
  func.func @transform_0(%arg0: i32, %arg1: i32) -> (i32, i32) {
    %c0_i32 = arith.constant 0 : i32
    %c0_i32_0 = arith.constant 0 : i32
    return %arg0, %c0_i32 : i32, i32
  }
  func.func @transform_1(%arg0: i32, %arg1: i32) -> (i32, i32, i32) {
    %c0_i32 = arith.constant 0 : i32
    %c0_i32_0 = arith.constant 0 : i32
    return %arg0, %arg1, %c0_i32 : i32, i32, i32
  }
  func.func @transform_2(%arg0: i32, %arg1: i32) -> (i32, i32, i32) {
    %c0_i32 = arith.constant 0 : i32
    %c0_i32_0 = arith.constant 0 : i32
    return %arg1, %arg0, %c0_i32 : i32, i32, i32
  }
  func.func @transform_3(%arg0: i32, %arg1: i32) -> (i32, i32) {
    %c0_i32 = arith.constant 0 : i32
    %c0_i32_0 = arith.constant 0 : i32
    %c0_i32_1 = arith.constant 0 : i32
    return %c0_i32, %c0_i32_0 : i32, i32
  }
  func.func @transform_4(%arg0: i32, %arg1: i32) -> (i32, i32) {
    %c0_i32 = arith.constant 0 : i32
    %c0_i32_0 = arith.constant 0 : i32
    %c0_i32_1 = arith.constant 0 : i32
    return %c0_i32, %c0_i32_0 : i32, i32
  }
  func.func @transform_5(%arg0: i32, %arg1: i32) -> (i32, i32) {
    %c0_i32 = arith.constant 0 : i32
    %c0_i32_0 = arith.constant 0 : i32
    %c0_i32_1 = arith.constant 0 : i32
    return %c0_i32, %c0_i32_0 : i32, i32
  }
  func.func @transform_6(%arg0: i32, %arg1: i32) -> (i32, i32) {
    %c0_i32 = arith.constant 0 : i32
    %c0_i32_0 = arith.constant 0 : i32
    return %arg0, %c0_i32 : i32, i32
  }
  func.func @transform_7(%arg0: i32, %arg1: i32) -> (i32, i32) {
    %c0_i32 = arith.constant 0 : i32
    %c0_i32_0 = arith.constant 0 : i32
    return %arg0, %c0_i32 : i32, i32
  }
}

</mosaic_0001>

<bundles_post_ra>
// kernel: tpu_custom_call.1
= control target key start
LH: loop header
LB: loop body
LE: loop exit
PB: predicated region body
PF: predicated region fallthrough
CT: control target
= control target key end

     0   :  { %s1589_s0 = inlined_call_operand.hbm [shape: bf16[2,64], index: 0, kind: input, shape index: {}]   ;;  %s1590_s1 = inlined_call_operand.hbm [shape: bf16[2,16,64], index: 1, kind: input, shape index: {}]   ;;  %s1591_s2 = inlined_call_operand.hbm [shape: f32[2,2,8], index: 2, kind: input, shape index: {}]   ;;  %s1592_s3 = inlined_call_operand.hbm [shape: bf16[64,64], index: 3, kind: input, shape index: {}]   ;;  %s1593_s4 = inlined_call_operand.hbm [shape: bf16[64,64], index: 4, kind: input, shape index: {}]   ;;  %s1594_s5 = inlined_call_operand.vmem [shape: f32[1,64], index: 5, kind: input, shape index: {}]   ;;  %s1595_s6 = inlined_call_operand.hbm [shape: f32[2,64], index: 6, kind: output, shape index: {0}]   ;;  %s1596_s7 = inlined_call_operand.hbm [shape: f32[2,64], index: 7, kind: output, shape index: {1}]  }
   0x1   :  { %1603 = sst [smem:[#allocation22_spill]] %s1589_s0 }
   0x2   :  { %1604 = sst [smem:[#allocation23_spill]] %s1590_s1 }
   0x3   :  { %1605 = sst [smem:[#allocation24_spill]] %s1595_s6 }
   0x4   :  { %1606 = sst [smem:[#allocation25_spill]] %s1596_s7 }
   0x5   :  { %13 = vsyncpa [#allocation6], 0 }
   0x6   :  { %14 = vsyncpa [#allocation9], 0 }
   0x7   :  { %16 = vsyncpa [#allocation9 + $0x1], 0 }
   0x8   :  { %17 = vsyncpa [#allocation12], 0 }
   0x9   :  { %18 = vsyncpa [#allocation7], 0 }
   0xa   :  { %19 = vsyncpa [#allocation16], 0  ;;  %s1371_s24 = smov 0   ;;  %s1373_s25 = smov 0  }
   0xb   :  { %s1375_s26 = smov 0   ;;  %s1377_s27 = smov 0  }
   0xc   :  { %s1379_s28 = smov 0   ;;  %s1381_s29 = smov 0  }
   0xd LB: > { %s1400_s30 = sadd.s32 4294967295, %s1312_s29   ;;  %p79_p0 = scmp.ne.s32.totalorder %s1300_s26, %s1296_s25  ;;  %s1312_s29 = sphi %s1381_s29, %s25_s29   ;;  %s1308_s28 = sphi %s1379_s28, %s1627_s28   ;;  %s1304_s27 = sphi %s1377_s27, %s1626_s27   ;;  %s1300_s26 = sphi %s1375_s26, %s1625_s26   ;;  %s1296_s25 = sphi %s1373_s25, %s1624_s25   ;;  %s1292_s24 = sphi %s1371_s24, %s1623_s24  }
   0xe   : > { %p80_p1 = scmp.eq.s32.totalorder %s1312_s29, 0  ;;  %p85_p2 = scmp.ne.s32.totalorder %s1296_s25, %s1292_s24 }
   0xf   : > { %p1597_p3 = scmp.eq.s32.totalorder %s1400_s30, 0  ;;  %p858_p5 = scmp.ge.s32.totalorder %s1312_s29, 1 }
  0x10   : > { %p81_p4 = por %p80_p1, %p79_p0  ;;  %p239_p7 = scmp.lt.s32.totalorder %s1312_s29, 3 }
  0x11   : > { %p1411_p6 = por %p1597_p3, %p85_p2  ;;  %s1314_s11 = smov [#allocation11]  }
  0x12   : > { %p1416_p8 = pnand %p858_p5, %p239_p7  ;;  %s264_s12 = sshll.u32 %s1314_s11, 4  ;;  %s265_s12 = int_to_ptr.vmem [resolvable:$true] %s264_s12 }
  0x13   : > { %p974_p10 = scmp.lt.s32.totalorder %s1312_s29, 2  ;;  %s34_s15 = sadd.s32 1, %s1308_s28 }
  0x14   : > { %p954_p9 = pneg %p1416_p8  ;;  %s1075_s16 = scalar_lea.vmem %s265_s12, 512 }
  0x15   : > { %p1429_p12 = pnand %p974_p10, %p81_p4  ;;  %p1076_p0 = scmp.ne.s32.totalorder %s265_s12, %s1075_s16 }
  0x16   : > { %p1425_p11 = pnand %p954_p9, %p1597_p3  ;;  %p1083_p5 = scmp.lt.s32.totalorder %s265_s12, %s265_s12 }
  0x17   : > { %p1084_p7 = scmp.lt.s32.totalorder %s1075_s16, %s1075_s16 }
  0x18   : > { %p1066_p13 = pneg %p1425_p11 }
  0x19   : > { %p1085_p9 = por %p1084_p7, %p1083_p5 }
  0x1a   : > { %p1078_p1 = pnand %p1076_p0, %p1066_p13 }
  0x1c   : > { %p1079_p2 = pneg %p1078_p1 }
  0x1e   : > { %p1086_p3 = pnand %p1085_p9, %p1079_p2 }
  0x20   : > { %1089 = shalt.err (!%p1086_p3)
}
  0x21   : > { %s1598_s17 = smov 64   ;;  %s1600_s18 = smov 4  }
  0x22   : > { %960 = dma.hbm_to_vmem [thread:$0]  (!%p1425_p11), %s1592_s3, 512, %s265_s12, [#allocation12], %s1598_s17, %s1598_s17, %s1600_s18  }
  0x23   : > { %p35_p3 = scmp.ge.s32.totalorder %s34_s15, 2  ;;  %s294_s21 = sand.u32 1, %s1312_s29  }
  0x24   : > { %s1602_s22 = sand.u32 1, %s1300_s26   ;;  %s864_s11 = sshll.u32 %s1308_s28, 6 }
  0x25   : > { %s1629_s15 = smov (%p35_p3, %s34_s15), 0  ;;  %s863_s23 = sshll.u32 %s1602_s22, 3 }
  0x26   : > { %s68_s24 = ssub.s32 %s1308_s28, %s1629_s15  ;;  %s1611_s1 = sld [smem:[#allocation23_spill]] }
  0x27   : > { %p70_p4 = scmp.eq.s32.totalorder %s68_s24, 0  ;;  %s298_s6 = scalar_lea.vmem [#allocation8], %s863_s23 }
  0x28   : > { %s307_s19 = sshll.u32 %s298_s6, 4  ;;  %s1612_s20 = sadd.s32 1, %s1300_s26  ;;  %s308_s19 = int_to_ptr.vmem [resolvable:$true] %s307_s19 }
  0x29   : > { %s1462_s12 = scalar_select %p70_p4, %s1300_s26, %s1612_s20  }
  0x2a   : > { %s1464_s17 = scalar_lea.sflag [#allocation9], %s294_s21  ;;  %p1092_p10 = pneg %p1429_p12 }
  0x2b   : > { %s1103_s18 = scalar_lea.vmem %s308_s19, 128  ;;  %s1317_s24 = smov [#allocation8]  }
  0x2c   : > { %s306_s7 = scalar_lea.hbm %s1611_s1, %s864_s11  ;;  %p1104_p0 = scmp.ne.s32.totalorder %s308_s19, %s1103_s18 }
  0x2d   : > { %s1108_s22 = sshll.u32 %s1317_s24, 4  ;;  %s1109_s22 = int_to_ptr.vmem [resolvable:$false] %s1108_s22 }
  0x2e   : > { %p1106_p1 = pnand %p1104_p0, %p1092_p10  ;;  %s1110_s8 = scalar_lea.vmem %s1109_s22, 256 }
  0x2f   : > { %p1111_p5 = scmp.lt.s32.totalorder %s308_s19, %s1109_s22  ;;  %p1112_p7 = scmp.lt.s32.totalorder %s1110_s8, %s1103_s18 }
  0x30   : > { %p1107_p2 = pneg %p1106_p1 }
  0x31   : > { %p1113_p9 = por %p1112_p7, %p1111_p5 }
  0x33   : > { %p1114_p3 = pnand %p1113_p9, %p1107_p2 }
  0x35   : > { %1117 = shalt.err (!%p1114_p3)
}
  0x36   : > { %s1318_s6 = smov 128   ;;  %s1613_s21 = smov 4  }
  0x37   : > { %s1614_s23 = smov 64   ;;  %s1319_s11 = smov [#allocation5]  }
  0x38   : > { %967 = dma.hbm_to_vmem [thread:$0]  (!%p1429_p12), %s306_s7, 128, %s308_s19, %s1464_s17, %s1318_s6, %s1614_s23, %s1613_s21  }
  0x39   : > { %s254_s16 = sshll.u32 %s1319_s11, 4  ;;  %s255_s16 = int_to_ptr.vmem [resolvable:$true] %s254_s16 }
  0x3a   : > { %s1129_s20 = scalar_lea.vmem %s255_s16, 16  ;;  %s1136_s18 = scalar_lea.vmem %s255_s16, 32 }
  0x3b   : > { %p1130_p4 = scmp.ne.s32.totalorder %s255_s16, %s1129_s20  ;;  %p1137_p2 = scmp.lt.s32.totalorder %s255_s16, %s255_s16 }
  0x3c   : > { %p1138_p5 = scmp.lt.s32.totalorder %s1136_s18, %s1129_s20 }
  0x3d   : > { %p1132_p0 = pnand %p1130_p4, %p1066_p13 }
  0x3e   : > { %p1139_p7 = por %p1138_p5, %p1137_p2 }
  0x3f   : > { %p1133_p1 = pneg %p1132_p0 }
  0x41   : > { %p1140_p9 = pnand %p1139_p7, %p1133_p1 }
  0x43   : > { %1143 = shalt.err (!%p1140_p9)
}
  0x44   : > { %s1615_s0 = sld [smem:[#allocation22_spill]]  ;;  %s1320_s7 = smov [#allocation13]  }
  0x45   : > { %s277_s19 = sshll.u32 %s1320_s7, 4  ;;  %s1616_s8 = sand.u32 1, %s1300_s26   ;;  %s278_s19 = int_to_ptr.vmem [resolvable:$true] %s277_s19 }
  0x46   : > { %s865_s6 = sshll.u32 %s1616_s8, 1  ;;  %s1155_s11 = scalar_lea.vmem %s278_s19, 512 }
  0x47   : > { %p1156_p3 = scmp.ne.s32.totalorder %s278_s19, %s1155_s11  ;;  %p1163_p1 = scmp.lt.s32.totalorder %s278_s19, %s278_s19 }
  0x48   : > { %p1164_p2 = scmp.lt.s32.totalorder %s1155_s11, %s1155_s11 }
  0x49   : > { %p1158_p4 = pnand %p1156_p3, %p1066_p13 }
  0x4a   : > { %957 = dma.hbm_to_vmem [thread:$0]  (!%p1425_p11), %s1615_s0, 16, %s255_s16, [#allocation6]  }
  0x4b   : > { %p1159_p0 = pneg %p1158_p4  ;;  %p1165_p5 = por %p1164_p2, %p1163_p1 }
  0x4d   : > { %p1166_p7 = pnand %p1165_p5, %p1159_p0 }
  0x4f   : > { %1169 = shalt.err (!%p1166_p7)
}
  0x50   : > { %963 = dma.hbm_to_vmem [thread:$0]  (!%p1425_p11), %s1593_s4, 512, %s278_s19, [#allocation12], %s1614_s23, %s1614_s23, %s1613_s21  }
  0x51   : > { %s866_s18 = sshll.u32 %s1308_s28, 5  ;;  %s321_s22 = scalar_lea.vmem [#allocation10], %s865_s6 }
  0x52   : > { %s329_s24 = sshll.u32 %s321_s22, 4  ;;  %s327_s11 = scalar_lea.hbm %s1591_s2, %s866_s18  ;;  %s330_s24 = int_to_ptr.vmem [resolvable:$true] %s329_s24 }
  0x53   : > { %s1183_s0 = scalar_lea.vmem %s330_s24, 32  ;;  %s1321_s13 = smov [#allocation10]  }
  0x54   : > { %p1184_p13 = scmp.ne.s32.totalorder %s330_s24, %s1183_s0  ;;  %s1188_s1 = sshll.u32 %s1321_s13, 4  ;;  %s1189_s1 = int_to_ptr.vmem [resolvable:$false] %s1188_s1 }
  0x55   : > { %s1190_s16 = scalar_lea.vmem %s1189_s1, 64  ;;  %p1191_p4 = scmp.lt.s32.totalorder %s330_s24, %s1189_s1 }
  0x56   : > { %p1186_p9 = pnand %p1184_p13, %p1092_p10  ;;  %p1192_p11 = scmp.lt.s32.totalorder %s1190_s16, %s1183_s0 }
  0x58   : > { %p1187_p3 = pneg %p1186_p9  ;;  %p1193_p0 = por %p1192_p11, %p1191_p4 }
  0x5a   : > { %p1194_p1 = pnand %p1193_p0, %p1187_p3 }
  0x5c   : > { %1197 = shalt.err (!%p1194_p1)
}
  0x5d   : > { %970 = dma.hbm_to_vmem [thread:$0]  (!%p1429_p12), %s327_s11, 32, %s330_s24, %s1464_s17  }
  0x5e   : > { %338 = sbr.rel (%p1416_p8) target bundleno = 1133 (0x46d), region = 44  ;;  %p1617_p2 = scmp.eq.s32.totalorder (!%p1416_p8), %s1400_s30, 0 }
  0x63   : > { %1271 = dma.done.wait (%p1617_p2), [#allocation6], 16   ;;  %p1618_p10 = pmov %p1617_p2 }
  0x64   : > { %s344_s0 = sand.u32 1, %s1400_s30   ;;  %s346_s1 = sand.u32 1, %s1296_s25  }
  0x65   : > { %1273 = vsyncadd (%p1618_p10), [#allocation6], 4294967280  ;;  %s869_s21 = sshll.u32 %s346_s1, 3  ;;  %s345_s23 = scalar_lea.sflag [#allocation9], %s344_s0 }
  0x66   : > { %s348_s19 = scalar_lea.vmem [#allocation8], %s869_s21 }
  0x67   : > { %1275 = dma.done.wait (%p1411_p6), %s345_s23, 160  }
  0x68   : > { %1277 = vsyncadd (%p1411_p6), %s345_s23, 4294967136  ;;  %s1519_s10 = sshll.u32 %s346_s1, 1  ;;  %p1619_p8 = pmov %p1617_p2 }
  0x69   : > { %s357_s14 = scalar_lea.vmem [#allocation10], %s1519_s10 }
  0x6a   : > { %1279 = dma.done.wait (%p1619_p8), [#allocation12], 1024   ;;  %p1620_p12 = pmov %p1617_p2 }
  0x6b   : > { %p873_p5 = scmp.ne.s32.totalorder %s1304_s27, 0 }
  0x6c   : > { %1281 = vsyncadd (%p1620_p12), [#allocation12], 4294966272 }
  0x6d   : > { %401 = sbr.rel (%p873_p5) target bundleno = 117 (0x75), region = 68 }
  0x72   : > { %vm402_vm0 = vcmask 1024   ;;  %vm405_vm1 = vcmask 517120   ;;  %v1322_v0 = vmov -inf   ;;  %v1323_v1 = vmov 0.0  }
  0x73   : > { %403 = vst.msk [vmem:[#allocation2] sm:$0x3] %vm402_vm0, %v1322_v0  ;;  %404 = vst.msk [vmem:[#allocation3] sm:$0x3] %vm402_vm0, %v1323_v1 }
  0x74   : > { %406 = vst.msk [vmem:[#allocation4] sm:$0x3] %vm405_vm1, %v1323_v1 }
  0x75 PF: > { %v407_v2 = vld [vmem:[#allocation5] sm:$0x1]  ;;  %v419_v3 = vlaneseq  ;;  %v1324_v4 = vmov 1966171168   ;;  %v893_v9 = vld [vmem:[%s348_s19] sm:$0xff]   ;;  %vm436_vm2 = vcmask 523264  }
  0x76   : > { %v417_v5 = vunpack.c.l.s4 %v1324_v4  ;;  %v408_v7 = vunpack.c.l.bf16 %v407_v2  ;;  %v894_v12 = vunpack.c.l.bf16 %v893_v9  ;;  %v895_v15 = vunpack.c.h.bf16 %v893_v9  ;;  %v413_v25 = vld [vmem:[%s357_s14] sm:$0x3]  ;;  %p874_p6 = scmp.ne.s32.totalorder %s1304_s27, 1 }
  0x77   : > { %v420_v6 = vshrl.u32 %v419_v3, 7  ;;  %v446_v22 = vand.u32 127, %v419_v3  ;;  %vm455_vm3 = vcmask 1041409   ;;  %vm414_vm4 = vcmp.gt.f32.partialorder %v413_v25, 0.0 }
  0x78   : > { %v418_v8 = vunpack.c.0.s8 %v417_v5  ;;  %vm460_vm5 = vcmask 58368   ;;  %v1325_v32 = vmov 0   ;;  %vm482_vm6 = vcmask 1024  }
  0x79   : > { %v426_v11 = vsub.s32 0, %v420_v6  ;;  %v449_v24 = vsub.s32 %v446_v22, %v420_v6  ;;  %1045 = vset.pattern.permute.xlu1 %v1325_v32  ;;  %1046 = vset.pattern.permute.xlu0 %v1325_v32  ;;  %v500_v41 = vsub.s32 1, %v420_v6  ;;  %vm526_vm7 = vcmask 517120  }
  0x7a   : > { %v421_v10 = vsub.s32 %v418_v8, %v420_v6  ;;  %v459_v33 = vld [vmem:[#allocation2] sm:$0x3]  ;;  %v476_v6 = vld [vmem:[#allocation3] sm:$0x3] }
  0x7b   : > { %v484_v61 = vld [vmem:[#allocation4] sm:$0x3] }
  0x7c   : > { %v422_v13 = vrot.slane %v408_v7, %v421_v10 }
  0x7e   : > { %v427_v14 = vrot.slane %v422_v13, %v426_v11  ;;  %v423_v16 = vcombine.high %v422_v13, %v422_v13 }
  0x80   : > { %v434_v17 = vmul.f32 %v894_v12, %v427_v14  ;;  %v431_v18 = vrot.slane %v423_v16, %v426_v11 }
  0x82   : > { %v437_v19 = vsel %vm436_vm2, %v434_v17, 0.0  ;;  %v435_v20 = vmul.f32 %v895_v15, %v431_v18 }
  0x83   : > { %438 = vadd.xlane.f32.xlu0 %v437_v19 }
  0x84   : > { %v440_v21 = vsel %vm436_vm2, %v435_v20, 0.0 }
  0x87   : > { %441 = vadd.xlane.f32.xlu0 %v440_v21 }
 0x10c   : > { %v439_v23 = vpop.xlane.xlu0 %438 }
 0x10d   : > { %v450_v27 = vrot.slane %v439_v23, %v449_v24 }
 0x110   : > { %v442_v26 = vpop.xlane.xlu0 %441 }
 0x111   : > { %v454_v28 = vrot.slane %v442_v26, %v449_v24 }
 0x113   : > { %v456_v29 = vsel %vm455_vm3, %v454_v28, %v450_v27 }
 0x114   : > { %v458_v30 = vsel %vm414_vm4, -10000.0, %v456_v29 }
 0x115   : > { %v461_v31 = vsel %vm460_vm5, %v458_v30, -inf }
 0x116   : > { %462 = vmax.xlane.f32.xlu1 %v461_v31 }
 0x19f   : > { %v463_v34 = vpop.xlane.xlu1 %462 }
 0x1a0   : > { %v464_v35 = vmax.f32 %v459_v33, %v463_v34 }
 0x1a2   : > { %v465_v36 = vsub.f32 %v459_v33, %v464_v35  ;;  %528 = vst.msk [vmem:[#allocation2] sm:$0x3] %vm482_vm6, %v464_v35  ;;  %470 = vperm.xlu1 %1045, %v464_v35  }
 0x1a4   : > { %v466_v40 = vmul.f32 1.442695, %v465_v36 }
 0x21d   : > { %v471_v37 = vpop.permute.xlu1 %470 }
 0x21e   : > { %v473_v38 = vsub.f32 %v458_v30, %v471_v37 }
 0x220   : > { %v474_v39 = vmul.f32 1.442695, %v473_v38 }
 0x222   : > { %1047 = vpow2.f32 %v474_v39 }
 0x223   : > { %1049 = vpow2.f32 %v466_v40 }
 0x22f   : > { %v1048_v42 = vpop.eup %1047 }
 0x230   : > { %v501_v43 = vrot.slane %v1048_v42, %v500_v41  ;;  %v494_v44 = vrot.slane %v1048_v42, %v426_v11  ;;  %v1050_v45 = vpop.eup %1049  ;;  %v478_v46 = vsel %vm460_vm5, %v1048_v42, 0.0 }
 0x231   : > { %v477_v7 = vmul.f32 %v1050_v45, %v476_v6 }
 0x232   : > { %503 = vbcast.lane.b32.xlu1 %v501_v43, 256  ;;  %496 = vbcast.lane.b32.xlu0 %v494_v44, 256 }
 0x236   : > { %487 = vperm.xlu0 %1046, %v1050_v45  }
 0x256   : > { %479 = vadd.xlane.f32.xlu1 %v478_v46 }
 0x2a4   : > { %v504_v47 = vpop.permute.xlu1 %503  ;;  %v497_v48 = vpop.permute.xlu0 %496 }
 0x2a5   : > { %v506_v49 = vmul.f32 %v895_v15, %v504_v47  ;;  %v505_v50 = vmul.f32 %v894_v12, %v497_v48 }
 0x2a7   : > { %v514_v51 = vsel %vm436_vm2, %v506_v49, 0.0  ;;  %v507_v52 = vsel %vm436_vm2, %v505_v50, 0.0 }
 0x2a8   : > { %v515_v53 = vrot.slane %v514_v51, 4  ;;  %v508_v54 = vrot.slane %v507_v52, 4 }
 0x2aa   : > { %v516_v55 = vadd.f32 %v515_v53, %v514_v51  ;;  %v509_v56 = vadd.f32 %v508_v54, %v507_v52 }
 0x2ac   : > { %v517_v57 = vrot.slane %v516_v55, 2  ;;  %v510_v58 = vrot.slane %v509_v56, 2 }
 0x2ae   : > { %v518_v59 = vadd.f32 %v517_v57, %v516_v55  ;;  %v511_v60 = vadd.f32 %v510_v58, %v509_v56 }
 0x2b0   : > { %v519_v62 = vrot.slane %v518_v59, 1  ;;  %v512_v63 = vrot.slane %v511_v60, 1 }
 0x2b1   : > { %v488_v0 = vpop.permute.xlu0 %487 }
 0x2b2   : > { %v520_v1 = vadd.f32 %v519_v62, %v518_v59  ;;  %v513_v2 = vadd.f32 %v512_v63, %v511_v60  ;;  %v490_v3 = vmul.f32 %v488_v0, %v484_v61 }
 0x2b4   : > { %v523_v4 = vsel %vm455_vm3, %v520_v1, %v513_v2 }
 0x2b5   : > { %v525_v5 = vadd.f32 %v523_v4, %v490_v3 }
 0x2b7   : > { %527 = vst.msk [vmem:[#allocation4] sm:$0x3] %vm526_vm7, %v525_v5 }
 0x2de   : > { %532 = sbr.rel (%p874_p6) target bundleno = 1100 (0x44c), region = 72 }
 0x2df   : > { %v480_v8 = vpop.xlane.xlu1 %479 }
 0x2e0   : > { %v481_v9 = vadd.f32 %v480_v8, %v477_v7 }
 0x2e2   : > { %483 = vst.msk [vmem:[#allocation3] sm:$0x3] %vm482_vm6, %v481_v9 }
 0x2e3   : > { %v1326_v11 = vmov 0   ;;  %v1327_v12 = vmov 0.0   ;;  %v1052_v13 = vld [vmem:[#allocation13 + $0x18] sm:$0xff]   ;;  %v1053_v14 = vld [vmem:[#allocation13 + $0x10] sm:$0xff]   ;;  %vm1328_vm8 = vmmov 0   ;;  %v1055_v17 = vld [vmem:[#allocation13 + $0x8] sm:$0xff]  }
 0x2e4   : > { %1051 = vset.pattern.permute.xlu0 %v1326_v11  ;;  %906 = vmatprep.subr.bf16.mxu0 %v1327_v12  ;;  %v1054_v15 = vld [vmem:[#allocation11 + $0x18] sm:$0xff]   ;;  %v1056_v16 = vld [vmem:[#allocation11 + $0x10] sm:$0xff]   ;;  %v1058_v18 = vld [vmem:[#allocation11 + $0x8] sm:$0xff]  }
 0x2e5   : > { %918 = vmatprep.subr.bf16.mxu1 %v1327_v12  ;;  %914 = vmatprep.mubr.msk.bf16.mxu0 %vm1328_vm8, %v1327_v12  ;;  %v1057_v19 = vld [vmem:[#allocation13] sm:$0xff]   ;;  %v552_v22 = vld [vmem:[#allocation5] sm:$0x1]  ;;  %v535_v23 = vld [vmem:[#allocation4] sm:$0x3] }
 0x2e6   : > { %907 = vmatpush3.bf16.msra.mxu0 %v1052_v13  ;;  %926 = vmatprep.mubr.msk.bf16.mxu1 %vm1328_vm8, %v1327_v12  ;;  %v1059_v20 = vld [vmem:[#allocation11] sm:$0xff]  }
 0x2e7   : > { %908 = vmatprep.subr.bf16.mxu0 %v1327_v12  ;;  %919 = vmatpush3.bf16.msra.mxu1 %v1054_v15  ;;  %v885_v32 = vld [vmem:[%s1594_s5] ss:$0 sm:$0xff] }
 0x2e8   : > { %920 = vmatprep.subr.bf16.mxu1 %v1327_v12 }
 0x2e9   : > { %v533_v10 = vld [vmem:[#allocation3] sm:$0x3] }
 0x2ea   : > { %1060 = vrcp.f32 %v533_v10  ;;  %909 = vmatpush3.bf16.msra.mxu0 %v1053_v14 }
 0x2eb   : > { %910 = vmatprep.subr.bf16.mxu0 %v1327_v12  ;;  %921 = vmatpush3.bf16.msra.mxu1 %v1056_v16 }
 0x2ec   : > { %922 = vmatprep.subr.bf16.mxu1 %v1327_v12 }
 0x2ee   : > { %911 = vmatpush3.bf16.msra.mxu0 %v1055_v17 }
 0x2ef   : > { %912 = vmatprep.subr.bf16.mxu0 %v1327_v12  ;;  %923 = vmatpush3.bf16.msra.mxu1 %v1058_v18 }
 0x2f0   : > { %924 = vmatprep.subr.bf16.mxu1 %v1327_v12 }
 0x2f2   : > { %913 = vmatpush3.bf16.msra.mxu0 %v1057_v19 }
 0x2f3   : > { %925 = vmatpush3.bf16.msra.mxu1 %v1059_v20 }
 0x2f5   : > { %915 = vmatmul.mubr.msk.bf16.vlgmr.msra.gmra.mxu0 %vm436_vm2, %v552_v22 }
 0x2f7   : > { %v1061_v21 = vpop.eup %1060 }
 0x2f8   : > { %538 = vperm.xlu0 %1051, %v1061_v21  }
 0x373   : > { %v539_v24 = vpop.permute.xlu0 %538 }
 0x374   : > { %v541_v25 = vmul.f32 %v539_v24, %v535_v23 }
 0x376   : > { %542 = vst.msk [vmem:[#allocation15] sm:$0x3] %vm526_vm7, %v541_v25  ;;  %v543_v26 = vpack.c.bf16 %v541_v25, %v541_v25 }
 0x378   : > { %927 = vmatmul.mubr.msk.bf16.vlgmr.msra.gmra.mxu1 %vm436_vm2, %v543_v26 }
 0x3b5   : > { %v622_v27 = vpop.f32.mrf.mxu0 }
 0x3b7   : > { %v916_v28 = vpop.f32.mrf.mxu0 }
 0x3b9   : > { %v625_v29 = vpop.f32.mrf.mxu0 }
 0x3bb   : > { %v917_v30 = vpop.f32.mrf.mxu0 }
 0x438   : > { %v689_v31 = vpop.f32.mrf.mxu1 }
 0x439   : > { %v690_v33 = vadd.f32 %v689_v31, %v622_v27 }
 0x43a   : > { %v928_v34 = vpop.f32.mrf.mxu1 }
 0x43b   : > { %v702_v35 = vadd.f32 %v885_v32, %v690_v33 }
 0x43c   : > { %v692_v36 = vpop.f32.mrf.mxu1 }
 0x43d   : > { %1062 = vtanh.f32 %v702_v35 }
 0x43e   : > { %v929_v37 = vpop.f32.mrf.mxu1 }
 0x44a   : > { %v1063_v38 = vpop.eup %1062 }
 0x44b   : > { %704 = vst.msk [vmem:[#allocation14] sm:$0x3] %vm526_vm7, %v1063_v38 }
 0x44c PF: > { %p978_p7 = scmp.eq.s32.totalorder %s1400_s30, 1  ;;  %s1329_s17 = smov [#allocation14]  }
 0x44d   : > { %s714_s6 = sshll.u32 %s1329_s17, 4  ;;  %s1330_s20 = smov [#allocation15]   ;;  %s715_s6 = int_to_ptr.vmem [resolvable:$true] %s714_s6 }
 0x44e   : > { %s727_s18 = sshll.u32 %s1330_s20, 4  ;;  %s1198_s22 = scalar_lea.vmem %s715_s6, 32  ;;  %s728_s18 = int_to_ptr.vmem [resolvable:$true] %s727_s18 }
 0x44f   : > { %p1199_p13 = scmp.ne.s32.totalorder %s715_s6, %s1198_s22  ;;  %p1205_p4 = scmp.lt.s32.totalorder %s715_s6, %s715_s6 }
 0x450   : > { %p1206_p11 = scmp.lt.s32.totalorder %s1198_s22, %s1198_s22 }
 0x451   : > { %p1200_p9 = pnand %p1199_p13, %p978_p7 }
 0x452   : > { %p1207_p0 = por %p1206_p11, %p1205_p4 }
 0x453   : > { %p1201_p3 = pneg %p1200_p9 }
 0x455   : > { %p1208_p1 = pnand %p1207_p0, %p1201_p3 }
 0x457   : > { %1211 = shalt.err (!%p1208_p1)
}
 0x458   : > { %s1621_s8 = sld [smem:[#allocation24_spill]]  ;;  %s1222_s11 = scalar_lea.vmem %s728_s18, 32 }
 0x459   : > { %p1223_p2 = scmp.ne.s32.totalorder %s728_s18, %s1222_s11  ;;  %p1229_p12 = scmp.lt.s32.totalorder %s728_s18, %s728_s18 }
 0x45a   : > { %p1230_p5 = scmp.lt.s32.totalorder %s1222_s11, %s1222_s11 }
 0x45b   : > { %p1224_p10 = pnand %p1223_p2, %p978_p7 }
 0x45c   : > { %p1231_p6 = por %p1230_p5, %p1229_p12 }
 0x45d   : > { %p1225_p8 = pneg %p1224_p10 }
 0x45e   : > { %947 = dma.vmem_to_hbm [thread:$0]  (%p978_p7), %s715_s6, 32, %s1621_s8, [#allocation7]  }
 0x45f   : > { %p1232_p13 = pnand %p1231_p6, %p1225_p8 }
 0x461   : > { %1235 = shalt.err (!%p1232_p13)
}
 0x462   : > { %s1622_s0 = sld [smem:[#allocation25_spill]] }
 0x468   : > { %949 = dma.vmem_to_hbm [thread:$0]  (%p978_p7), %s728_s18, 32, %s1622_s0, [#allocation16]  }
 0x469   : > { %1283 = dma.done.wait (%p978_p7), [#allocation7], 32  }
 0x46a   : > { %1285 = vsyncadd (%p978_p7), [#allocation7], 4294967264 }
 0x46b   : > { %1287 = dma.done.wait (%p978_p7), [#allocation16], 32  }
 0x46c   : > { %1289 = vsyncadd (%p978_p7), [#allocation16], 4294967264 }
 0x46d PF: > { %s25_s29 = sadd.s32 1, %s1312_s29   ;;  %s1623_s24 = smov %s1296_s25 }
 0x46e   : > { %p22_p9 = scmp.ge.s32.totalorder %s25_s29, 4   ;;  %s1624_s25 = smov %s1300_s26 }
 0x46f   : > { %s1625_s26 = smov %s1462_s12  ;;  %s1626_s27 = smov %s1308_s28 }
 0x470   : > { %s1627_s28 = smov %s1629_s15  ;;  %24 = sbr.rel (!%p22_p9) target bundleno = 13 (0xd), region = 124 }
 0x475   :  { %744 = vsyncpa [#allocation6], 1 }
 0x476   :  { %746 = vsyncpa [#allocation6 + $0x1], 1 }
 0x477   :  { %747 = vsyncpa [#allocation9], 1 }
 0x478   :  { %749 = vsyncpa [#allocation9 + $0x1], 1 }
 0x479   :  { %750 = vsyncpa [#allocation12], 1 }
 0x47a   :  { %751 = vsyncpa [#allocation7], 1 }
 0x47b   :  { %753 = vsyncpa [#allocation7 + $0x1], 1 }
 0x47c   :  { %754 = vsyncpa [#allocation16], 1 }

// kernel: tpu_custom_call.1
= control target key start
LH: loop header
LB: loop body
LE: loop exit
PB: predicated region body
PF: predicated region fallthrough
CT: control target
= control target key end

     0   :  { %s1589_s0 = inlined_call_operand.hbm [shape: bf16[2,64], index: 0, kind: input, shape index: {}]   ;;  %s1590_s1 = inlined_call_operand.hbm [shape: bf16[2,16,64], index: 1, kind: input, shape index: {}]   ;;  %s1591_s2 = inlined_call_operand.hbm [shape: f32[2,2,8], index: 2, kind: input, shape index: {}]   ;;  %s1592_s3 = inlined_call_operand.hbm [shape: bf16[64,64], index: 3, kind: input, shape index: {}]   ;;  %s1593_s4 = inlined_call_operand.hbm [shape: bf16[64,64], index: 4, kind: input, shape index: {}]   ;;  %s1594_s5 = inlined_call_operand.vmem [shape: f32[1,64], index: 5, kind: input, shape index: {}]   ;;  %s1595_s6 = inlined_call_operand.hbm [shape: f32[2,64], index: 6, kind: output, shape index: {0}]   ;;  %s1596_s7 = inlined_call_operand.hbm [shape: f32[2,64], index: 7, kind: output, shape index: {1}]  }
   0x1   :  { %1603 = sst [smem:[#allocation22_spill]] %s1589_s0 }
   0x2   :  { %1604 = sst [smem:[#allocation23_spill]] %s1590_s1 }
   0x3   :  { %1605 = sst [smem:[#allocation24_spill]] %s1595_s6 }
   0x4   :  { %1606 = sst [smem:[#allocation25_spill]] %s1596_s7 }
   0x5   :  { %13 = vsyncpa [#allocation6], 0 }
   0x6   :  { %14 = vsyncpa [#allocation9], 0 }
   0x7   :  { %16 = vsyncpa [#allocation9 + $0x1], 0 }
   0x8   :  { %17 = vsyncpa [#allocation12], 0 }
   0x9   :  { %18 = vsyncpa [#allocation7], 0 }
   0xa   :  { %19 = vsyncpa [#allocation16], 0  ;;  %s1371_s24 = smov 0   ;;  %s1373_s25 = smov 0  }
   0xb   :  { %s1375_s26 = smov 0   ;;  %s1377_s27 = smov 0  }
   0xc   :  { %s1379_s28 = smov 0   ;;  %s1381_s29 = smov 0  }
   0xd LB: > { %s1400_s30 = sadd.s32 4294967295, %s1312_s29   ;;  %p79_p0 = scmp.ne.s32.totalorder %s1300_s26, %s1296_s25  ;;  %s1312_s29 = sphi %s1381_s29, %s25_s29   ;;  %s1308_s28 = sphi %s1379_s28, %s1627_s28   ;;  %s1304_s27 = sphi %s1377_s27, %s1626_s27   ;;  %s1300_s26 = sphi %s1375_s26, %s1625_s26   ;;  %s1296_s25 = sphi %s1373_s25, %s1624_s25   ;;  %s1292_s24 = sphi %s1371_s24, %s1623_s24  }
   0xe   : > { %p80_p1 = scmp.eq.s32.totalorder %s1312_s29, 0  ;;  %p85_p2 = scmp.ne.s32.totalorder %s1296_s25, %s1292_s24 }
   0xf   : > { %p1597_p3 = scmp.eq.s32.totalorder %s1400_s30, 0  ;;  %p858_p5 = scmp.ge.s32.totalorder %s1312_s29, 1 }
  0x10   : > { %p81_p4 = por %p80_p1, %p79_p0  ;;  %p239_p7 = scmp.lt.s32.totalorder %s1312_s29, 3 }
  0x11   : > { %p1411_p6 = por %p1597_p3, %p85_p2  ;;  %s1314_s11 = smov [#allocation11]  }
  0x12   : > { %p1416_p8 = pnand %p858_p5, %p239_p7  ;;  %s264_s12 = sshll.u32 %s1314_s11, 4  ;;  %s265_s12 = int_to_ptr.vmem [resolvable:$true] %s264_s12 }
  0x13   : > { %p974_p10 = scmp.lt.s32.totalorder %s1312_s29, 2  ;;  %s34_s15 = sadd.s32 1, %s1308_s28 }
  0x14   : > { %p954_p9 = pneg %p1416_p8  ;;  %s1075_s16 = scalar_lea.vmem %s265_s12, 512 }
  0x15   : > { %p1429_p12 = pnand %p974_p10, %p81_p4  ;;  %p1076_p0 = scmp.ne.s32.totalorder %s265_s12, %s1075_s16 }
  0x16   : > { %p1425_p11 = pnand %p954_p9, %p1597_p3  ;;  %p1083_p5 = scmp.lt.s32.totalorder %s265_s12, %s265_s12 }
  0x17   : > { %p1084_p7 = scmp.lt.s32.totalorder %s1075_s16, %s1075_s16 }
  0x18   : > { %p1066_p13 = pneg %p1425_p11 }
  0x19   : > { %p1085_p9 = por %p1084_p7, %p1083_p5 }
  0x1a   : > { %p1078_p1 = pnand %p1076_p0, %p1066_p13 }
  0x1c   : > { %p1079_p2 = pneg %p1078_p1 }
  0x1e   : > { %p1086_p3 = pnand %p1085_p9, %p1079_p2 }
  0x20   : > { %1089 = shalt.err (!%p1086_p3)
}
  0x21   : > { %s1598_s17 = smov 64   ;;  %s1600_s18 = smov 4  }
  0x22   : > { %960 = dma.hbm_to_vmem [thread:$0]  (!%p1425_p11), %s1592_s3, 512, %s265_s12, [#allocation12], %s1598_s17, %s1598_s17, %s1600_s18  }
  0x23   : > { %p35_p3 = scmp.ge.s32.totalorder %s34_s15, 2  ;;  %s294_s21 = sand.u32 1, %s1312_s29  }
  0x24   : > { %s1602_s22 = sand.u32 1, %s1300_s26   ;;  %s864_s11 = sshll.u32 %s1308_s28, 6 }
  0x25   : > { %s1629_s15 = smov (%p35_p3, %s34_s15), 0  ;;  %s863_s23 = sshll.u32 %s1602_s22, 3 }
  0x26   : > { %s68_s24 = ssub.s32 %s1308_s28, %s1629_s15  ;;  %s1611_s1 = sld [smem:[#allocation23_spill]] }
  0x27   : > { %p70_p4 = scmp.eq.s32.totalorder %s68_s24, 0  ;;  %s298_s6 = scalar_lea.vmem [#allocation8], %s863_s23 }
  0x28   : > { %s307_s19 = sshll.u32 %s298_s6, 4  ;;  %s1612_s20 = sadd.s32 1, %s1300_s26  ;;  %s308_s19 = int_to_ptr.vmem [resolvable:$true] %s307_s19 }
  0x29   : > { %s1462_s12 = scalar_select %p70_p4, %s1300_s26, %s1612_s20  }
  0x2a   : > { %s1464_s17 = scalar_lea.sflag [#allocation9], %s294_s21  ;;  %p1092_p10 = pneg %p1429_p12 }
  0x2b   : > { %s1103_s18 = scalar_lea.vmem %s308_s19, 128  ;;  %s1317_s24 = smov [#allocation8]  }
  0x2c   : > { %s306_s7 = scalar_lea.hbm %s1611_s1, %s864_s11  ;;  %p1104_p0 = scmp.ne.s32.totalorder %s308_s19, %s1103_s18 }
  0x2d   : > { %s1108_s22 = sshll.u32 %s1317_s24, 4  ;;  %s1109_s22 = int_to_ptr.vmem [resolvable:$false] %s1108_s22 }
  0x2e   : > { %p1106_p1 = pnand %p1104_p0, %p1092_p10  ;;  %s1110_s8 = scalar_lea.vmem %s1109_s22, 256 }
  0x2f   : > { %p1111_p5 = scmp.lt.s32.totalorder %s308_s19, %s1109_s22  ;;  %p1112_p7 = scmp.lt.s32.totalorder %s1110_s8, %s1103_s18 }
  0x30   : > { %p1107_p2 = pneg %p1106_p1 }
  0x31   : > { %p1113_p9 = por %p1112_p7, %p1111_p5 }
  0x33   : > { %p1114_p3 = pnand %p1113_p9, %p1107_p2 }
  0x35   : > { %1117 = shalt.err (!%p1114_p3)
}
  0x36   : > { %s1318_s6 = smov 128   ;;  %s1613_s21 = smov 4  }
  0x37   : > { %s1614_s23 = smov 64   ;;  %s1319_s11 = smov [#allocation5]  }
  0x38   : > { %967 = dma.hbm_to_vmem [thread:$0]  (!%p1429_p12), %s306_s7, 128, %s308_s19, %s1464_s17, %s1318_s6, %s1614_s23, %s1613_s21  }
  0x39   : > { %s254_s16 = sshll.u32 %s1319_s11, 4  ;;  %s255_s16 = int_to_ptr.vmem [resolvable:$true] %s254_s16 }
  0x3a   : > { %s1129_s20 = scalar_lea.vmem %s255_s16, 16  ;;  %s1136_s18 = scalar_lea.vmem %s255_s16, 32 }
  0x3b   : > { %p1130_p4 = scmp.ne.s32.totalorder %s255_s16, %s1129_s20  ;;  %p1137_p2 = scmp.lt.s32.totalorder %s255_s16, %s255_s16 }
  0x3c   : > { %p1138_p5 = scmp.lt.s32.totalorder %s1136_s18, %s1129_s20 }
  0x3d   : > { %p1132_p0 = pnand %p1130_p4, %p1066_p13 }
  0x3e   : > { %p1139_p7 = por %p1138_p5, %p1137_p2 }
  0x3f   : > { %p1133_p1 = pneg %p1132_p0 }
  0x41   : > { %p1140_p9 = pnand %p1139_p7, %p1133_p1 }
  0x43   : > { %1143 = shalt.err (!%p1140_p9)
}
  0x44   : > { %s1615_s0 = sld [smem:[#allocation22_spill]]  ;;  %s1320_s7 = smov [#allocation13]  }
  0x45   : > { %s277_s19 = sshll.u32 %s1320_s7, 4  ;;  %s1616_s8 = sand.u32 1, %s1300_s26   ;;  %s278_s19 = int_to_ptr.vmem [resolvable:$true] %s277_s19 }
  0x46   : > { %s865_s6 = sshll.u32 %s1616_s8, 1  ;;  %s1155_s11 = scalar_lea.vmem %s278_s19, 512 }
  0x47   : > { %p1156_p3 = scmp.ne.s32.totalorder %s278_s19, %s1155_s11  ;;  %p1163_p1 = scmp.lt.s32.totalorder %s278_s19, %s278_s19 }
  0x48   : > { %p1164_p2 = scmp.lt.s32.totalorder %s1155_s11, %s1155_s11 }
  0x49   : > { %p1158_p4 = pnand %p1156_p3, %p1066_p13 }
  0x4a   : > { %957 = dma.hbm_to_vmem [thread:$0]  (!%p1425_p11), %s1615_s0, 16, %s255_s16, [#allocation6]  }
  0x4b   : > { %p1159_p0 = pneg %p1158_p4  ;;  %p1165_p5 = por %p1164_p2, %p1163_p1 }
  0x4d   : > { %p1166_p7 = pnand %p1165_p5, %p1159_p0 }
  0x4f   : > { %1169 = shalt.err (!%p1166_p7)
}
  0x50   : > { %963 = dma.hbm_to_vmem [thread:$0]  (!%p1425_p11), %s1593_s4, 512, %s278_s19, [#allocation12], %s1614_s23, %s1614_s23, %s1613_s21  }
  0x51   : > { %s866_s18 = sshll.u32 %s1308_s28, 5  ;;  %s321_s22 = scalar_lea.vmem [#allocation10], %s865_s6 }
  0x52   : > { %s329_s24 = sshll.u32 %s321_s22, 4  ;;  %s327_s11 = scalar_lea.hbm %s1591_s2, %s866_s18  ;;  %s330_s24 = int_to_ptr.vmem [resolvable:$true] %s329_s24 }
  0x53   : > { %s1183_s0 = scalar_lea.vmem %s330_s24, 32  ;;  %s1321_s13 = smov [#allocation10]  }
  0x54   : > { %p1184_p13 = scmp.ne.s32.totalorder %s330_s24, %s1183_s0  ;;  %s1188_s1 = sshll.u32 %s1321_s13, 4  ;;  %s1189_s1 = int_to_ptr.vmem [resolvable:$false] %s1188_s1 }
  0x55   : > { %s1190_s16 = scalar_lea.vmem %s1189_s1, 64  ;;  %p1191_p4 = scmp.lt.s32.totalorder %s330_s24, %s1189_s1 }
  0x56   : > { %p1186_p9 = pnand %p1184_p13, %p1092_p10  ;;  %p1192_p11 = scmp.lt.s32.totalorder %s1190_s16, %s1183_s0 }
  0x58   : > { %p1187_p3 = pneg %p1186_p9  ;;  %p1193_p0 = por %p1192_p11, %p1191_p4 }
  0x5a   : > { %p1194_p1 = pnand %p1193_p0, %p1187_p3 }
  0x5c   : > { %1197 = shalt.err (!%p1194_p1)
}
  0x5d   : > { %970 = dma.hbm_to_vmem [thread:$0]  (!%p1429_p12), %s327_s11, 32, %s330_s24, %s1464_s17  }
  0x5e   : > { %338 = sbr.rel (%p1416_p8) target bundleno = 1133 (0x46d), region = 44  ;;  %p1617_p2 = scmp.eq.s32.totalorder (!%p1416_p8), %s1400_s30, 0 }
  0x63   : > { %1271 = dma.done.wait (%p1617_p2), [#allocation6], 16   ;;  %p1618_p10 = pmov %p1617_p2 }
  0x64   : > { %s344_s0 = sand.u32 1, %s1400_s30   ;;  %s346_s1 = sand.u32 1, %s1296_s25  }
  0x65   : > { %1273 = vsyncadd (%p1618_p10), [#allocation6], 4294967280  ;;  %s869_s21 = sshll.u32 %s346_s1, 3  ;;  %s345_s23 = scalar_lea.sflag [#allocation9], %s344_s0 }
  0x66   : > { %s348_s19 = scalar_lea.vmem [#allocation8], %s869_s21 }
  0x67   : > { %1275 = dma.done.wait (%p1411_p6), %s345_s23, 160  }
  0x68   : > { %1277 = vsyncadd (%p1411_p6), %s345_s23, 4294967136  ;;  %s1519_s10 = sshll.u32 %s346_s1, 1  ;;  %p1619_p8 = pmov %p1617_p2 }
  0x69   : > { %s357_s14 = scalar_lea.vmem [#allocation10], %s1519_s10 }
  0x6a   : > { %1279 = dma.done.wait (%p1619_p8), [#allocation12], 1024   ;;  %p1620_p12 = pmov %p1617_p2 }
  0x6b   : > { %p873_p5 = scmp.ne.s32.totalorder %s1304_s27, 0 }
  0x6c   : > { %1281 = vsyncadd (%p1620_p12), [#allocation12], 4294966272 }
  0x6d   : > { %401 = sbr.rel (%p873_p5) target bundleno = 117 (0x75), region = 68 }
  0x72   : > { %vm402_vm0 = vcmask 1024   ;;  %vm405_vm1 = vcmask 517120   ;;  %v1322_v0 = vmov -inf   ;;  %v1323_v1 = vmov 0.0  }
  0x73   : > { %403 = vst.msk [vmem:[#allocation2] sm:$0x3] %vm402_vm0, %v1322_v0  ;;  %404 = vst.msk [vmem:[#allocation3] sm:$0x3] %vm402_vm0, %v1323_v1 }
  0x74   : > { %406 = vst.msk [vmem:[#allocation4] sm:$0x3] %vm405_vm1, %v1323_v1 }
  0x75 PF: > { %v407_v2 = vld [vmem:[#allocation5] sm:$0x1]  ;;  %v419_v3 = vlaneseq  ;;  %v1324_v4 = vmov 1966171168   ;;  %v893_v9 = vld [vmem:[%s348_s19] sm:$0xff]   ;;  %vm436_vm2 = vcmask 523264  }
  0x76   : > { %v417_v5 = vunpack.c.l.s4 %v1324_v4  ;;  %v408_v7 = vunpack.c.l.bf16 %v407_v2  ;;  %v894_v12 = vunpack.c.l.bf16 %v893_v9  ;;  %v895_v15 = vunpack.c.h.bf16 %v893_v9  ;;  %v413_v25 = vld [vmem:[%s357_s14] sm:$0x3]  ;;  %p874_p6 = scmp.ne.s32.totalorder %s1304_s27, 1 }
  0x77   : > { %v420_v6 = vshrl.u32 %v419_v3, 7  ;;  %v446_v22 = vand.u32 127, %v419_v3  ;;  %vm455_vm3 = vcmask 1041409   ;;  %vm414_vm4 = vcmp.gt.f32.partialorder %v413_v25, 0.0 }
  0x78   : > { %v418_v8 = vunpack.c.0.s8 %v417_v5  ;;  %vm460_vm5 = vcmask 58368   ;;  %v1325_v32 = vmov 0   ;;  %vm482_vm6 = vcmask 1024  }
  0x79   : > { %v426_v11 = vsub.s32 0, %v420_v6  ;;  %v449_v24 = vsub.s32 %v446_v22, %v420_v6  ;;  %1045 = vset.pattern.permute.xlu1 %v1325_v32  ;;  %1046 = vset.pattern.permute.xlu0 %v1325_v32  ;;  %v500_v41 = vsub.s32 1, %v420_v6  ;;  %vm526_vm7 = vcmask 517120  }
  0x7a   : > { %v421_v10 = vsub.s32 %v418_v8, %v420_v6  ;;  %v459_v33 = vld [vmem:[#allocation2] sm:$0x3]  ;;  %v476_v6 = vld [vmem:[#allocation3] sm:$0x3] }
  0x7b   : > { %v484_v61 = vld [vmem:[#allocation4] sm:$0x3] }
  0x7c   : > { %v422_v13 = vrot.slane %v408_v7, %v421_v10 }
  0x7e   : > { %v427_v14 = vrot.slane %v422_v13, %v426_v11  ;;  %v423_v16 = vcombine.high %v422_v13, %v422_v13 }
  0x80   : > { %v434_v17 = vmul.f32 %v894_v12, %v427_v14  ;;  %v431_v18 = vrot.slane %v423_v16, %v426_v11 }
  0x82   : > { %v437_v19 = vsel %vm436_vm2, %v434_v17, 0.0  ;;  %v435_v20 = vmul.f32 %v895_v15, %v431_v18 }
  0x83   : > { %438 = vadd.xlane.f32.xlu0 %v437_v19 }
  0x84   : > { %v440_v21 = vsel %vm436_vm2, %v435_v20, 0.0 }
  0x87   : > { %441 = vadd.xlane.f32.xlu0 %v440_v21 }
 0x10c   : > { %v439_v23 = vpop.xlane.xlu0 %438 }
 0x10d   : > { %v450_v27 = vrot.slane %v439_v23, %v449_v24 }
 0x110   : > { %v442_v26 = vpop.xlane.xlu0 %441 }
 0x111   : > { %v454_v28 = vrot.slane %v442_v26, %v449_v24 }
 0x113   : > { %v456_v29 = vsel %vm455_vm3, %v454_v28, %v450_v27 }
 0x114   : > { %v458_v30 = vsel %vm414_vm4, -10000.0, %v456_v29 }
 0x115   : > { %v461_v31 = vsel %vm460_vm5, %v458_v30, -inf }
 0x116   : > { %462 = vmax.xlane.f32.xlu1 %v461_v31 }
 0x19f   : > { %v463_v34 = vpop.xlane.xlu1 %462 }
 0x1a0   : > { %v464_v35 = vmax.f32 %v459_v33, %v463_v34 }
 0x1a2   : > { %v465_v36 = vsub.f32 %v459_v33, %v464_v35  ;;  %528 = vst.msk [vmem:[#allocation2] sm:$0x3] %vm482_vm6, %v464_v35  ;;  %470 = vperm.xlu1 %1045, %v464_v35  }
 0x1a4   : > { %v466_v40 = vmul.f32 1.442695, %v465_v36 }
 0x21d   : > { %v471_v37 = vpop.permute.xlu1 %470 }
 0x21e   : > { %v473_v38 = vsub.f32 %v458_v30, %v471_v37 }
 0x220   : > { %v474_v39 = vmul.f32 1.442695, %v473_v38 }
 0x222   : > { %1047 = vpow2.f32 %v474_v39 }
 0x223   : > { %1049 = vpow2.f32 %v466_v40 }
 0x22f   : > { %v1048_v42 = vpop.eup %1047 }
 0x230   : > { %v501_v43 = vrot.slane %v1048_v42, %v500_v41  ;;  %v494_v44 = vrot.slane %v1048_v42, %v426_v11  ;;  %v1050_v45 = vpop.eup %1049  ;;  %v478_v46 = vsel %vm460_vm5, %v1048_v42, 0.0 }
 0x231   : > { %v477_v7 = vmul.f32 %v1050_v45, %v476_v6 }
 0x232   : > { %503 = vbcast.lane.b32.xlu1 %v501_v43, 256  ;;  %496 = vbcast.lane.b32.xlu0 %v494_v44, 256 }
 0x236   : > { %487 = vperm.xlu0 %1046, %v1050_v45  }
 0x256   : > { %479 = vadd.xlane.f32.xlu1 %v478_v46 }
 0x2a4   : > { %v504_v47 = vpop.permute.xlu1 %503  ;;  %v497_v48 = vpop.permute.xlu0 %496 }
 0x2a5   : > { %v506_v49 = vmul.f32 %v895_v15, %v504_v47  ;;  %v505_v50 = vmul.f32 %v894_v12, %v497_v48 }
 0x2a7   : > { %v514_v51 = vsel %vm436_vm2, %v506_v49, 0.0  ;;  %v507_v52 = vsel %vm436_vm2, %v505_v50, 0.0 }
 0x2a8   : > { %v515_v53 = vrot.slane %v514_v51, 4  ;;  %v508_v54 = vrot.slane %v507_v52, 4 }
 0x2aa   : > { %v516_v55 = vadd.f32 %v515_v53, %v514_v51  ;;  %v509_v56 = vadd.f32 %v508_v54, %v507_v52 }
 0x2ac   : > { %v517_v57 = vrot.slane %v516_v55, 2  ;;  %v510_v58 = vrot.slane %v509_v56, 2 }
 0x2ae   : > { %v518_v59 = vadd.f32 %v517_v57, %v516_v55  ;;  %v511_v60 = vadd.f32 %v510_v58, %v509_v56 }
 0x2b0   : > { %v519_v62 = vrot.slane %v518_v59, 1  ;;  %v512_v63 = vrot.slane %v511_v60, 1 }
 0x2b1   : > { %v488_v0 = vpop.permute.xlu0 %487 }
 0x2b2   : > { %v520_v1 = vadd.f32 %v519_v62, %v518_v59  ;;  %v513_v2 = vadd.f32 %v512_v63, %v511_v60  ;;  %v490_v3 = vmul.f32 %v488_v0, %v484_v61 }
 0x2b4   : > { %v523_v4 = vsel %vm455_vm3, %v520_v1, %v513_v2 }
 0x2b5   : > { %v525_v5 = vadd.f32 %v523_v4, %v490_v3 }
 0x2b7   : > { %527 = vst.msk [vmem:[#allocation4] sm:$0x3] %vm526_vm7, %v525_v5 }
 0x2de   : > { %532 = sbr.rel (%p874_p6) target bundleno = 1100 (0x44c), region = 72 }
 0x2df   : > { %v480_v8 = vpop.xlane.xlu1 %479 }
 0x2e0   : > { %v481_v9 = vadd.f32 %v480_v8, %v477_v7 }
 0x2e2   : > { %483 = vst.msk [vmem:[#allocation3] sm:$0x3] %vm482_vm6, %v481_v9 }
 0x2e3   : > { %v1326_v11 = vmov 0   ;;  %v1327_v12 = vmov 0.0   ;;  %v1052_v13 = vld [vmem:[#allocation13 + $0x18] sm:$0xff]   ;;  %v1053_v14 = vld [vmem:[#allocation13 + $0x10] sm:$0xff]   ;;  %vm1328_vm8 = vmmov 0   ;;  %v1055_v17 = vld [vmem:[#allocation13 + $0x8] sm:$0xff]  }
 0x2e4   : > { %1051 = vset.pattern.permute.xlu0 %v1326_v11  ;;  %906 = vmatprep.subr.bf16.mxu0 %v1327_v12  ;;  %v1054_v15 = vld [vmem:[#allocation11 + $0x18] sm:$0xff]   ;;  %v1056_v16 = vld [vmem:[#allocation11 + $0x10] sm:$0xff]   ;;  %v1058_v18 = vld [vmem:[#allocation11 + $0x8] sm:$0xff]  }
 0x2e5   : > { %918 = vmatprep.subr.bf16.mxu1 %v1327_v12  ;;  %914 = vmatprep.mubr.msk.bf16.mxu0 %vm1328_vm8, %v1327_v12  ;;  %v1057_v19 = vld [vmem:[#allocation13] sm:$0xff]   ;;  %v552_v22 = vld [vmem:[#allocation5] sm:$0x1]  ;;  %v535_v23 = vld [vmem:[#allocation4] sm:$0x3] }
 0x2e6   : > { %907 = vmatpush3.bf16.msra.mxu0 %v1052_v13  ;;  %926 = vmatprep.mubr.msk.bf16.mxu1 %vm1328_vm8, %v1327_v12  ;;  %v1059_v20 = vld [vmem:[#allocation11] sm:$0xff]  }
 0x2e7   : > { %908 = vmatprep.subr.bf16.mxu0 %v1327_v12  ;;  %919 = vmatpush3.bf16.msra.mxu1 %v1054_v15  ;;  %v885_v32 = vld [vmem:[%s1594_s5] ss:$0 sm:$0xff] }
 0x2e8   : > { %920 = vmatprep.subr.bf16.mxu1 %v1327_v12 }
 0x2e9   : > { %v533_v10 = vld [vmem:[#allocation3] sm:$0x3] }
 0x2ea   : > { %1060 = vrcp.f32 %v533_v10  ;;  %909 = vmatpush3.bf16.msra.mxu0 %v1053_v14 }
 0x2eb   : > { %910 = vmatprep.subr.bf16.mxu0 %v1327_v12  ;;  %921 = vmatpush3.bf16.msra.mxu1 %v1056_v16 }
 0x2ec   : > { %922 = vmatprep.subr.bf16.mxu1 %v1327_v12 }
 0x2ee   : > { %911 = vmatpush3.bf16.msra.mxu0 %v1055_v17 }
 0x2ef   : > { %912 = vmatprep.subr.bf16.mxu0 %v1327_v12  ;;  %923 = vmatpush3.bf16.msra.mxu1 %v1058_v18 }
 0x2f0   : > { %924 = vmatprep.subr.bf16.mxu1 %v1327_v12 }
 0x2f2   : > { %913 = vmatpush3.bf16.msra.mxu0 %v1057_v19 }
 0x2f3   : > { %925 = vmatpush3.bf16.msra.mxu1 %v1059_v20 }
 0x2f5   : > { %915 = vmatmul.mubr.msk.bf16.vlgmr.msra.gmra.mxu0 %vm436_vm2, %v552_v22 }
 0x2f7   : > { %v1061_v21 = vpop.eup %1060 }
 0x2f8   : > { %538 = vperm.xlu0 %1051, %v1061_v21  }
 0x373   : > { %v539_v24 = vpop.permute.xlu0 %538 }
 0x374   : > { %v541_v25 = vmul.f32 %v539_v24, %v535_v23 }
 0x376   : > { %542 = vst.msk [vmem:[#allocation15] sm:$0x3] %vm526_vm7, %v541_v25  ;;  %v543_v26 = vpack.c.bf16 %v541_v25, %v541_v25 }
 0x378   : > { %927 = vmatmul.mubr.msk.bf16.vlgmr.msra.gmra.mxu1 %vm436_vm2, %v543_v26 }
 0x3b5   : > { %v622_v27 = vpop.f32.mrf.mxu0 }
 0x3b7   : > { %v916_v28 = vpop.f32.mrf.mxu0 }
 0x3b9   : > { %v625_v29 = vpop.f32.mrf.mxu0 }
 0x3bb   : > { %v917_v30 = vpop.f32.mrf.mxu0 }
 0x438   : > { %v689_v31 = vpop.f32.mrf.mxu1 }
 0x439   : > { %v690_v33 = vadd.f32 %v689_v31, %v622_v27 }
 0x43a   : > { %v928_v34 = vpop.f32.mrf.mxu1 }
 0x43b   : > { %v702_v35 = vadd.f32 %v885_v32, %v690_v33 }
 0x43c   : > { %v692_v36 = vpop.f32.mrf.mxu1 }
 0x43d   : > { %1062 = vtanh.f32 %v702_v35 }
 0x43e   : > { %v929_v37 = vpop.f32.mrf.mxu1 }
 0x44a   : > { %v1063_v38 = vpop.eup %1062 }
 0x44b   : > { %704 = vst.msk [vmem:[#allocation14] sm:$0x3] %vm526_vm7, %v1063_v38 }
 0x44c PF: > { %p978_p7 = scmp.eq.s32.totalorder %s1400_s30, 1  ;;  %s1329_s17 = smov [#allocation14]  }
 0x44d   : > { %s714_s6 = sshll.u32 %s1329_s17, 4  ;;  %s1330_s20 = smov [#allocation15]   ;;  %s715_s6 = int_to_ptr.vmem [resolvable:$true] %s714_s6 }
 0x44e   : > { %s727_s18 = sshll.u32 %s1330_s20, 4  ;;  %s1198_s22 = scalar_lea.vmem %s715_s6, 32  ;;  %s728_s18 = int_to_ptr.vmem [resolvable:$true] %s727_s18 }
 0x44f   : > { %p1199_p13 = scmp.ne.s32.totalorder %s715_s6, %s1198_s22  ;;  %p1205_p4 = scmp.lt.s32.totalorder %s715_s6, %s715_s6 }
 0x450   : > { %p1206_p11 = scmp.lt.s32.totalorder %s1198_s22, %s1198_s22 }
 0x451   : > { %p1200_p9 = pnand %p1199_p13, %p978_p7 }
 0x452   : > { %p1207_p0 = por %p1206_p11, %p1205_p4 }
 0x453   : > { %p1201_p3 = pneg %p1200_p9 }
 0x455   : > { %p1208_p1 = pnand %p1207_p0, %p1201_p3 }
 0x457   : > { %1211 = shalt.err (!%p1208_p1)
}
 0x458   : > { %s1621_s8 = sld [smem:[#allocation24_spill]]  ;;  %s1222_s11 = scalar_lea.vmem %s728_s18, 32 }
 0x459   : > { %p1223_p2 = scmp.ne.s32.totalorder %s728_s18, %s1222_s11  ;;  %p1229_p12 = scmp.lt.s32.totalorder %s728_s18, %s728_s18 }
 0x45a   : > { %p1230_p5 = scmp.lt.s32.totalorder %s1222_s11, %s1222_s11 }
 0x45b   : > { %p1224_p10 = pnand %p1223_p2, %p978_p7 }
 0x45c   : > { %p1231_p6 = por %p1230_p5, %p1229_p12 }
 0x45d   : > { %p1225_p8 = pneg %p1224_p10 }
 0x45e   : > { %947 = dma.vmem_to_hbm [thread:$0]  (%p978_p7), %s715_s6, 32, %s1621_s8, [#allocation7]  }
 0x45f   : > { %p1232_p13 = pnand %p1231_p6, %p1225_p8 }
 0x461   : > { %1235 = shalt.err (!%p1232_p13)
}
 0x462   : > { %s1622_s0 = sld [smem:[#allocation25_spill]] }
 0x468   : > { %949 = dma.vmem_to_hbm [thread:$0]  (%p978_p7), %s728_s18, 32, %s1622_s0, [#allocation16]  }
 0x469   : > { %1283 = dma.done.wait (%p978_p7), [#allocation7], 32  }
 0x46a   : > { %1285 = vsyncadd (%p978_p7), [#allocation7], 4294967264 }
 0x46b   : > { %1287 = dma.done.wait (%p978_p7), [#allocation16], 32  }
 0x46c   : > { %1289 = vsyncadd (%p978_p7), [#allocation16], 4294967264 }
 0x46d PF: > { %s25_s29 = sadd.s32 1, %s1312_s29   ;;  %s1623_s24 = smov %s1296_s25 }
 0x46e   : > { %p22_p9 = scmp.ge.s32.totalorder %s25_s29, 4   ;;  %s1624_s25 = smov %s1300_s26 }
 0x46f   : > { %s1625_s26 = smov %s1462_s12  ;;  %s1626_s27 = smov %s1308_s28 }
 0x470   : > { %s1627_s28 = smov %s1629_s15  ;;  %24 = sbr.rel (!%p22_p9) target bundleno = 13 (0xd), region = 124 }
 0x475   :  { %744 = vsyncpa [#allocation6], 1 }
 0x476   :  { %746 = vsyncpa [#allocation6 + $0x1], 1 }
 0x477   :  { %747 = vsyncpa [#allocation9], 1 }
 0x478   :  { %749 = vsyncpa [#allocation9 + $0x1], 1 }
 0x479   :  { %750 = vsyncpa [#allocation12], 1 }
 0x47a   :  { %751 = vsyncpa [#allocation7], 1 }
 0x47b   :  { %753 = vsyncpa [#allocation7 + $0x1], 1 }
 0x47c   :  { %754 = vsyncpa [#allocation16], 1 }

</bundles_post_ra>
